<compile_context>
chip_gen: v7x
topology: tpu7x:2x2x1
jax: 0.10.0
libtpu: 0.0.40
codegen_flags: <defaults>
</compile_context>

<pallas_src>
import functools

import jax
import jax.numpy as jnp
from jax.experimental import pallas as pl
from jax.experimental.pallas import tpu as pltpu


# ----------------------------------------------------------------------------
# Fused kernel: all LSTM layers (bidirectional) + mean over time + Linear.
# ----------------------------------------------------------------------------
def _fused_lstm_kernel(T, B, H, L, *args):
    """args = [x_flat, (wih, whh, b) * L, fc_w, fc_b, out_ref, outf_scr, outb_scr].

    x_flat    : (T*B, Din)  time-major rows (row t*B+b = x[b, t])
    wih (l=0) : (Din, 8H)   packed [i_f i_b f_f f_b g_f g_b o_f o_b]
    wih (l>0) : (2H, 8H)    rows [0:H] act on fwd input half, [H:2H] on bwd half
    whh       : (2H, 8H)    block-diagonal packed recurrent weights
    b         : (1, 8H)     b_ih + b_hh, packed like wih columns
    """
    n_in = 1 + 3 * L + 2
    x_ref = args[0]
    layer_refs = [(args[1 + 3 * l], args[2 + 3 * l], args[3 + 3 * l])
                  for l in range(L)]
    wfc_ref = args[n_in - 2]
    bfc_ref = args[n_in - 1]
    out_ref = args[n_in]
    outf_scr = args[n_in + 1]
    outb_scr = args[n_in + 2]

    f32 = jnp.float32
    H2, H8 = 2 * H, 8 * H

    # Lane masks / constants, computed once and reused by every unrolled step.
    lane = jax.lax.broadcasted_iota(jnp.int32, (B, H8), 1)
    fwd_lanes = (lane % H2) < H                      # forward-direction lanes
    g_lanes = (lane >= 2 * H2) & (lane < 3 * H2)     # 'g' gate lanes -> tanh
    # tanh(x) = 2*sigmoid(2x) - 1  ==>  one sigmoid pass over all gate lanes.
    act_scale = jnp.where(g_lanes, 2.0, 1.0).astype(f32)   # (B, 8H)
    act_off = jnp.where(g_lanes, 1.0, 0.0).astype(f32)     # (B, 8H)

    x = x_ref[...].astype(f32)                       # (T*B, Din)

    hsum = None                                      # (B, 2H) running sum
    cur_f = None                                     # (T*B, H) prev-layer fwd h
    cur_b = None                                     # (T*B, H) prev-layer bwd h

    for l in range(L):
        wih_ref, whh_ref, b_ref = layer_refs[l]
        whh = whh_ref[...]                           # (2H, 8H)
        bias = b_ref[...]                            # (1, 8H)
        is_last = (l == L - 1)

        # ---- hoisted input projection over the whole sequence -----------
        if l == 0:
            proj = jnp.dot(x, wih_ref[...],
                           preferred_element_type=f32) + bias       # (T*B, 8H)
        else:
            wih = wih_ref[...]                       # (2H, 8H)
            proj = (jnp.dot(cur_f, wih[0:H, :], preferred_element_type=f32)
                    + jnp.dot(cur_b, wih[H:H2, :], preferred_element_type=f32)
                    + bias)

        # ---- fused fwd+bwd recurrence, fully unrolled over time ---------
        h = jnp.zeros((B, H2), f32)                  # [h_fwd | h_bwd]
        c = jnp.zeros((B, H2), f32)
        if is_last:
            hsum = jnp.zeros((B, H2), f32)

        for s in range(T):
            tf = s                                   # forward time index
            tb = T - 1 - s                           # backward time index
            row_f = proj[tf * B:(tf + 1) * B, :]     # fwd lanes valid here
            row_b = proj[tb * B:(tb + 1) * B, :]     # bwd lanes valid here
            xg = jnp.where(fwd_lanes, row_f, row_b)
            gates = xg + jnp.dot(h, whh, preferred_element_type=f32)  # (B, 8H)
            # Single sigmoid covers both sigmoid (i/f/o) and tanh (g) lanes.
            act = jax.nn.sigmoid(gates * act_scale) * act_scale - act_off
            i_g = act[:, 0 * H2:1 * H2]
            f_g = act[:, 1 * H2:2 * H2]
            g_g = act[:, 2 * H2:3 * H2]
            o_g = act[:, 3 * H2:4 * H2]
            c = f_g * c + i_g * g_g
            h = o_g * jnp.tanh(c)
            if is_last:
                hsum = hsum + h                      # mean folded into loop
            else:
                outf_scr[tf * B:(tf + 1) * B, :] = h[:, 0:H]
                outb_scr[tb * B:(tb + 1) * B, :] = h[:, H:H2]

        if not is_last:
            cur_f = outf_scr[...]
            cur_b = outb_scr[...]

    # ---- mean over time + final Linear, same kernel ----------------------
    mean = hsum * (1.0 / T)
    out_ref[...] = (jnp.dot(mean, wfc_ref[...], preferred_element_type=f32)
                    + bfc_ref[...])


# ----------------------------------------------------------------------------
# Wrapper.
# ----------------------------------------------------------------------------
def action_recognition_lstm(x, packed):
    """x: (B, T, input_size), batch-first like the PyTorch module."""
    B, T, D = x.shape
    layers = packed["lstm"]
    L = len(layers)
    H = layers[0][1].shape[0] // 2          # whh_blk is (2H, 8H)
    C = packed["fc_w"].shape[1]

    x_flat = jnp.transpose(x, (1, 0, 2)).reshape(T * B, D)   # time-major rows

    flat_w = []
    for (wih, whh, b) in layers:
        flat_w += [wih, whh, b]

    kernel = functools.partial(_fused_lstm_kernel, T, B, H, L)
    return pl.pallas_call(
        kernel,
        out_shape=jax.ShapeDtypeStruct((B, C), jnp.float32),
        scratch_shapes=[
            pltpu.VMEM((T * B, H), jnp.float32),   # fwd hidden states per layer
            pltpu.VMEM((T * B, H), jnp.float32),   # bwd hidden states per layer
        ],
    )(x_flat, *flat_w, packed["fc_w"], packed["fc_b"])


# ----------------------------------------------------------------------------
# Weight packing (done once, outside the kernel).
# ----------------------------------------------------------------------------
def _pack_cols(wf, wb, H):
    """(rows, 4H) fwd + (rows, 4H) bwd -> (rows, 8H), gate-major / dir-minor."""
    rows = wf.shape[0]
    return jnp.stack([wf.reshape(rows, 4, H), wb.reshape(rows, 4, H)],
                     axis=2).reshape(rows, 8 * H)


def pack_params(raw):
    H = raw["hidden_size"]
    packed_layers = []
    for (fwd, bwd) in raw["lstm"]:
        wih_f, whh_f, b_f = fwd
        wih_b, whh_b, b_b = bwd
        wih_packed = _pack_cols(wih_f, wih_b, H)                   # (Din, 8H)
        b_packed = _pack_cols(b_f, b_b, H)                         # (1, 8H)
        top = _pack_cols(whh_f, jnp.zeros_like(whh_f), H)          # (H, 8H)
        bot = _pack_cols(jnp.zeros_like(whh_b), whh_b, H)          # (H, 8H)
        whh_blk = jnp.concatenate([top, bot], axis=0)              # (2H, 8H)
        packed_layers.append((wih_packed, whh_blk, b_packed))
    return {"lstm": packed_layers, "fc_w": raw["fc_w"], "fc_b": raw["fc_b"]}


# ----------------------------------------------------------------------------
# Pure-JAX reference (lax.scan), same raw weights, for correctness check.
# ----------------------------------------------------------------------------
def _lstm_dir_ref(x_tm, wih_t, whh_t, b):
    T, B, D = x_tm.shape
    H = whh_t.shape[0]

    def step(carry, xt):
        h, c = carry
        gates = xt @ wih_t + h @ whh_t + b[0]
        i = jax.nn.sigmoid(gates[:, :H])
        f = jax.nn.sigmoid(gates[:, H:2 * H])
        g = jnp.tanh(gates[:, 2 * H:3 * H])
        o = jax.nn.sigmoid(gates[:, 3 * H:])
        c = f * c + i * g
        h = o * jnp.tanh(c)
        return (h, c), h

    (_, _), ys = jax.lax.scan(
        step, (jnp.zeros((B, H), jnp.float32), jnp.zeros((B, H), jnp.float32)),
        x_tm)
    return ys


def _reference(x, raw):
    x_tm = jnp.transpose(x, (1, 0, 2))
    layer_in = x_tm
    for (fwd, bwd) in raw["lstm"]:
        out_f = _lstm_dir_ref(layer_in, *fwd)
        out_b = jnp.flip(_lstm_dir_ref(jnp.flip(layer_in, axis=0), *bwd), axis=0)
        layer_in = jnp.concatenate([out_f, out_b], axis=-1)
    m = jnp.mean(layer_in, axis=0)
    return m @ raw["fc_w"] + raw["fc_b"]


# ----------------------------------------------------------------------------
# Deterministic parameter init (PyTorch-style uniform(-1/sqrt(H), 1/sqrt(H))).
# ----------------------------------------------------------------------------
def init_params(key, input_size, hidden_size, num_classes, num_layers):
    H = hidden_size
    bound = 1.0 / jnp.sqrt(jnp.float32(H))
    params = {"lstm": [], "hidden_size": H}
    for layer in range(num_layers):
        d_in = input_size if layer == 0 else 2 * H
        dirs = []
        for _direction in range(2):
            key, k1, k2, k3, k4 = jax.random.split(key, 5)
            w_ih_t = jax.random.uniform(k1, (d_in, 4 * H), jnp.float32, -bound, bound)
            w_hh_t = jax.random.uniform(k2, (H, 4 * H), jnp.float32, -bound, bound)
            b_ih = jax.random.uniform(k3, (4 * H,), jnp.float32, -bound, bound)
            b_hh = jax.random.uniform(k4, (4 * H,), jnp.float32, -bound, bound)
            dirs.append((w_ih_t, w_hh_t, (b_ih + b_hh)[None, :]))
        params["lstm"].append(tuple(dirs))
    key, kw, kb = jax.random.split(key, 3)
    fc_bound = 1.0 / jnp.sqrt(jnp.float32(2 * H))
    params["fc_w"] = jax.random.uniform(kw, (2 * H, num_classes), jnp.float32,
                                        -fc_bound, fc_bound)
    params["fc_b"] = jax.random.uniform(kb, (1, num_classes), jnp.float32,
                                        -fc_bound, fc_bound)
    return params


if __name__ == "__main__":
    B, T = 2, 8
    input_size, hidden_size, num_classes, num_layers = 16, 32, 5, 2

    key = jax.random.PRNGKey(0)
    key, kx, kp = jax.random.split(key, 3)
    x = jax.random.normal(kx, (B, T, input_size), jnp.float32)
    raw = init_params(kp, input_size, hidden_size, num_classes, num_layers)
    packed = pack_params(raw)

    fwd = jax.jit(action_recognition_lstm)
    out = jax.block_until_ready(fwd(x, packed))
    assert out.shape == (B, num_classes), out.shape

    ref = jax.block_until_ready(_reference(x, raw))
    assert jnp.allclose(out, ref, atol=5e-3, rtol=5e-3), (out, ref)

    print("KERNEL_OK")
</pallas_src>

<mosaic_0001>
module attributes {stable_mosaic.version = 11 : i64} {
  func.func @_fused_lstm_kernel(%arg0: memref<16x16xf32, #tpu.memory_space<vmem>>, %arg1: memref<16x256xf32, #tpu.memory_space<vmem>>, %arg2: memref<64x256xf32, #tpu.memory_space<vmem>>, %arg3: memref<1x256xf32, #tpu.memory_space<vmem>>, %arg4: memref<64x256xf32, #tpu.memory_space<vmem>>, %arg5: memref<64x256xf32, #tpu.memory_space<vmem>>, %arg6: memref<1x256xf32, #tpu.memory_space<vmem>>, %arg7: memref<64x5xf32, #tpu.memory_space<vmem>>, %arg8: memref<1x5xf32, #tpu.memory_space<vmem>>, %arg9: memref<2x5xf32, #tpu.memory_space<vmem>>, %arg10: memref<16x32xf32, #tpu.memory_space<vmem>>, %arg11: memref<16x32xf32, #tpu.memory_space<vmem>>) attributes {dimension_semantics = [], scalar_prefetch = 0 : i64, scratch_operands = 2 : i64, tpu.core_type = #tpu.core_type<tc>} {
    %0 = tpu.iota {dimensions = array<i32: 1>} : vector<2x256xi32>
    %c64_i32 = arith.constant 64 : i32
    %c0_i32 = arith.constant 0 : i32
    %1 = arith.cmpi eq, %c64_i32, %c0_i32 : i32
    %c1_i32 = arith.constant 1 : i32
    %2 = arith.select %1, %c1_i32, %c64_i32 : i32
    %3 = vector.broadcast %2 : i32 to vector<2x256xi32>
    %4 = arith.remsi %0, %3 : vector<2x256xi32>
    %c0_i32_0 = arith.constant 0 : i32
    %5 = vector.broadcast %c0_i32_0 : i32 to vector<2x256xi32>
    %6 = arith.cmpi ne, %4, %5 : vector<2x256xi32>
    %c0_i32_1 = arith.constant 0 : i32
    %7 = vector.broadcast %c0_i32_1 : i32 to vector<2x256xi32>
    %8 = arith.cmpi slt, %4, %7 : vector<2x256xi32>
    %c0_i32_2 = arith.constant 0 : i32
    %9 = arith.cmpi slt, %2, %c0_i32_2 : i32
    %10 = vector.broadcast %9 : i1 to vector<2x256xi1>
    %11 = vector.broadcast %10 : vector<2x256xi1> to vector<2x256xi1>
    %12 = arith.xori %8, %11 : vector<2x256xi1>
    %13 = arith.andi %12, %6 : vector<2x256xi1>
    %14 = vector.broadcast %2 : i32 to vector<2x256xi32>
    %15 = arith.addi %4, %14 : vector<2x256xi32>
    %16 = arith.select %13, %15, %4 : vector<2x256xi1>, vector<2x256xi32>
    %c32_i32 = arith.constant 32 : i32
    %17 = vector.broadcast %c32_i32 : i32 to vector<2x256xi32>
    %18 = arith.cmpi slt, %16, %17 : vector<2x256xi32>
    %c128_i32 = arith.constant 128 : i32
    %19 = vector.broadcast %c128_i32 : i32 to vector<2x256xi32>
    %20 = arith.cmpi sge, %0, %19 : vector<2x256xi32>
    %c192_i32 = arith.constant 192 : i32
    %21 = vector.broadcast %c192_i32 : i32 to vector<2x256xi32>
    %22 = arith.cmpi slt, %0, %21 : vector<2x256xi32>
    %23 = arith.andi %20, %22 : vector<2x256xi1>
    %cst = arith.constant 2.000000e+00 : f32
    %cst_3 = arith.constant 1.000000e+00 : f32
    %24 = vector.broadcast %cst : f32 to vector<2x256xf32>
    %25 = vector.broadcast %cst_3 : f32 to vector<2x256xf32>
    %26 = arith.select %23, %24, %25 : vector<2x256xi1>, vector<2x256xf32>
    %cst_4 = arith.constant 1.000000e+00 : f32
    %cst_5 = arith.constant 0.000000e+00 : f32
    %27 = vector.broadcast %cst_4 : f32 to vector<2x256xf32>
    %28 = vector.broadcast %cst_5 : f32 to vector<2x256xf32>
    %29 = arith.select %23, %27, %28 : vector<2x256xi1>, vector<2x256xf32>
    %c0 = arith.constant 0 : index
    %c0_6 = arith.constant 0 : index
    %30 = vector.load %arg0[%c0, %c0_6] : memref<16x16xf32, #tpu.memory_space<vmem>>, vector<16x16xf32>
    %c0_7 = arith.constant 0 : index
    %c0_8 = arith.constant 0 : index
    %31 = vector.load %arg2[%c0_7, %c0_8] : memref<64x256xf32, #tpu.memory_space<vmem>>, vector<64x256xf32>
    %c0_9 = arith.constant 0 : index
    %c0_10 = arith.constant 0 : index
    %32 = vector.load %arg3[%c0_9, %c0_10] : memref<1x256xf32, #tpu.memory_space<vmem>>, vector<1x256xf32>
    %c0_11 = arith.constant 0 : index
    %c0_12 = arith.constant 0 : index
    %33 = vector.load %arg1[%c0_11, %c0_12] : memref<16x256xf32, #tpu.memory_space<vmem>>, vector<16x256xf32>
    %cst_13 = arith.constant dense<0.000000e+00> : vector<16x256xf32>
    %34 = tpu.matmul %30, %33, %cst_13 {dimension_numbers = #tpu.dot_dimension_numbers<[1], [0], [0], [1], [0, 0, 1, 1], [], []>} : vector<16x16xf32>, vector<16x256xf32>, vector<16x256xf32> -> vector<16x256xf32>
    %35 = vector.broadcast %32 : vector<1x256xf32> to vector<16x256xf32>
    %36 = arith.addf %34, %35 : vector<16x256xf32>
    %cst_14 = arith.constant 0.000000e+00 : f32
    %37 = vector.broadcast %cst_14 : f32 to vector<2x64xf32>
    %cst_15 = arith.constant 0.000000e+00 : f32
    %38 = vector.broadcast %cst_15 : f32 to vector<2x64xf32>
    %39 = vector.extract_strided_slice %36 {offsets = [0, 0], sizes = [2, 256], strides = [1, 1]} : vector<16x256xf32> to vector<2x256xf32>
    %40 = vector.extract_strided_slice %36 {offsets = [14, 0], sizes = [2, 256], strides = [1, 1]} : vector<16x256xf32> to vector<2x256xf32>
    %41 = arith.select %18, %39, %40 : vector<2x256xi1>, vector<2x256xf32>
    %cst_16 = arith.constant dense<0.000000e+00> : vector<2x256xf32>
    %42 = tpu.matmul %37, %31, %cst_16 {dimension_numbers = #tpu.dot_dimension_numbers<[1], [0], [0], [1], [0, 0, 1, 1], [], []>} : vector<2x64xf32>, vector<64x256xf32>, vector<2x256xf32> -> vector<2x256xf32>
    %43 = arith.addf %41, %42 : vector<2x256xf32>
    %44 = arith.mulf %43, %26 : vector<2x256xf32>
    %45 = arith.negf %44 : vector<2x256xf32>
    %46 = math.exp %45 : vector<2x256xf32>
    %cst_17 = arith.constant 1.000000e+00 : f32
    %47 = vector.broadcast %cst_17 : f32 to vector<2x256xf32>
    %48 = arith.addf %47, %46 : vector<2x256xf32>
    %49 = arith.divf %47, %48 : vector<2x256xf32>
    %50 = arith.mulf %49, %26 : vector<2x256xf32>
    %51 = arith.subf %50, %29 : vector<2x256xf32>
    %52 = vector.extract_strided_slice %51 {offsets = [0, 0], sizes = [2, 64], strides = [1, 1]} : vector<2x256xf32> to vector<2x64xf32>
    %53 = vector.extract_strided_slice %51 {offsets = [0, 64], sizes = [2, 64], strides = [1, 1]} : vector<2x256xf32> to vector<2x64xf32>
    %54 = vector.extract_strided_slice %51 {offsets = [0, 128], sizes = [2, 64], strides = [1, 1]} : vector<2x256xf32> to vector<2x64xf32>
    %55 = vector.extract_strided_slice %51 {offsets = [0, 192], sizes = [2, 64], strides = [1, 1]} : vector<2x256xf32> to vector<2x64xf32>
    %56 = arith.mulf %53, %38 : vector<2x64xf32>
    %57 = arith.mulf %52, %54 : vector<2x64xf32>
    %58 = arith.addf %56, %57 : vector<2x64xf32>
    %59 = math.tanh %58 : vector<2x64xf32>
    %60 = arith.mulf %55, %59 : vector<2x64xf32>
    %61 = vector.extract_strided_slice %60 {offsets = [0, 0], sizes = [2, 32], strides = [1, 1]} : vector<2x64xf32> to vector<2x32xf32>
    %c0_18 = arith.constant 0 : index
    %c0_19 = arith.constant 0 : index
    %62 = vector.load %arg10[%c0_18, %c0_19] : memref<16x32xf32, #tpu.memory_space<vmem>>, vector<2x32xf32>
    tpu.vector_store %arg10[%c0_18, %c0_19], %61 {strides = array<i32>} : memref<16x32xf32, #tpu.memory_space<vmem>>, vector<2x32xf32>,
    %63 = vector.extract_strided_slice %60 {offsets = [0, 32], sizes = [2, 32], strides = [1, 1]} : vector<2x64xf32> to vector<2x32xf32>
    %c14 = arith.constant 14 : index
    %c0_20 = arith.constant 0 : index
    %64 = vector.load %arg11[%c14, %c0_20] : memref<16x32xf32, #tpu.memory_space<vmem>>, vector<2x32xf32>
    tpu.vector_store %arg11[%c14, %c0_20], %63 {strides = array<i32>} : memref<16x32xf32, #tpu.memory_space<vmem>>, vector<2x32xf32>,
    %65 = vector.extract_strided_slice %36 {offsets = [2, 0], sizes = [2, 256], strides = [1, 1]} : vector<16x256xf32> to vector<2x256xf32>
    %66 = vector.extract_strided_slice %36 {offsets = [12, 0], sizes = [2, 256], strides = [1, 1]} : vector<16x256xf32> to vector<2x256xf32>
    %67 = arith.select %18, %65, %66 : vector<2x256xi1>, vector<2x256xf32>
    %cst_21 = arith.constant dense<0.000000e+00> : vector<2x256xf32>
    %68 = tpu.matmul %60, %31, %cst_21 {dimension_numbers = #tpu.dot_dimension_numbers<[1], [0], [0], [1], [0, 0, 1, 1], [], []>} : vector<2x64xf32>, vector<64x256xf32>, vector<2x256xf32> -> vector<2x256xf32>
    %69 = arith.addf %67, %68 : vector<2x256xf32>
    %70 = arith.mulf %69, %26 : vector<2x256xf32>
    %71 = arith.negf %70 : vector<2x256xf32>
    %72 = math.exp %71 : vector<2x256xf32>
    %cst_22 = arith.constant 1.000000e+00 : f32
    %73 = vector.broadcast %cst_22 : f32 to vector<2x256xf32>
    %74 = arith.addf %73, %72 : vector<2x256xf32>
    %75 = arith.divf %73, %74 : vector<2x256xf32>
    %76 = arith.mulf %75, %26 : vector<2x256xf32>
    %77 = arith.subf %76, %29 : vector<2x256xf32>
    %78 = vector.extract_strided_slice %77 {offsets = [0, 0], sizes = [2, 64], strides = [1, 1]} : vector<2x256xf32> to vector<2x64xf32>
    %79 = vector.extract_strided_slice %77 {offsets = [0, 64], sizes = [2, 64], strides = [1, 1]} : vector<2x256xf32> to vector<2x64xf32>
    %80 = vector.extract_strided_slice %77 {offsets = [0, 128], sizes = [2, 64], strides = [1, 1]} : vector<2x256xf32> to vector<2x64xf32>
    %81 = vector.extract_strided_slice %77 {offsets = [0, 192], sizes = [2, 64], strides = [1, 1]} : vector<2x256xf32> to vector<2x64xf32>
    %82 = arith.mulf %79, %58 : vector<2x64xf32>
    %83 = arith.mulf %78, %80 : vector<2x64xf32>
    %84 = arith.addf %82, %83 : vector<2x64xf32>
    %85 = math.tanh %84 : vector<2x64xf32>
    %86 = arith.mulf %81, %85 : vector<2x64xf32>
    %87 = vector.extract_strided_slice %86 {offsets = [0, 0], sizes = [2, 32], strides = [1, 1]} : vector<2x64xf32> to vector<2x32xf32>
    %c2 = arith.constant 2 : index
    %c0_23 = arith.constant 0 : index
    %88 = vector.load %arg10[%c2, %c0_23] : memref<16x32xf32, #tpu.memory_space<vmem>>, vector<2x32xf32>
    tpu.vector_store %arg10[%c2, %c0_23], %87 {strides = array<i32>} : memref<16x32xf32, #tpu.memory_space<vmem>>, vector<2x32xf32>,
    %89 = vector.extract_strided_slice %86 {offsets = [0, 32], sizes = [2, 32], strides = [1, 1]} : vector<2x64xf32> to vector<2x32xf32>
    %c12 = arith.constant 12 : index
    %c0_24 = arith.constant 0 : index
    %90 = vector.load %arg11[%c12, %c0_24] : memref<16x32xf32, #tpu.memory_space<vmem>>, vector<2x32xf32>
    tpu.vector_store %arg11[%c12, %c0_24], %89 {strides = array<i32>} : memref<16x32xf32, #tpu.memory_space<vmem>>, vector<2x32xf32>,
    %91 = vector.extract_strided_slice %36 {offsets = [4, 0], sizes = [2, 256], strides = [1, 1]} : vector<16x256xf32> to vector<2x256xf32>
    %92 = vector.extract_strided_slice %36 {offsets = [10, 0], sizes = [2, 256], strides = [1, 1]} : vector<16x256xf32> to vector<2x256xf32>
    %93 = arith.select %18, %91, %92 : vector<2x256xi1>, vector<2x256xf32>
    %cst_25 = arith.constant dense<0.000000e+00> : vector<2x256xf32>
    %94 = tpu.matmul %86, %31, %cst_25 {dimension_numbers = #tpu.dot_dimension_numbers<[1], [0], [0], [1], [0, 0, 1, 1], [], []>} : vector<2x64xf32>, vector<64x256xf32>, vector<2x256xf32> -> vector<2x256xf32>
    %95 = arith.addf %93, %94 : vector<2x256xf32>
    %96 = arith.mulf %95, %26 : vector<2x256xf32>
    %97 = arith.negf %96 : vector<2x256xf32>
    %98 = math.exp %97 : vector<2x256xf32>
    %cst_26 = arith.constant 1.000000e+00 : f32
    %99 = vector.broadcast %cst_26 : f32 to vector<2x256xf32>
    %100 = arith.addf %99, %98 : vector<2x256xf32>
    %101 = arith.divf %99, %100 : vector<2x256xf32>
    %102 = arith.mulf %101, %26 : vector<2x256xf32>
    %103 = arith.subf %102, %29 : vector<2x256xf32>
    %104 = vector.extract_strided_slice %103 {offsets = [0, 0], sizes = [2, 64], strides = [1, 1]} : vector<2x256xf32> to vector<2x64xf32>
    %105 = vector.extract_strided_slice %103 {offsets = [0, 64], sizes = [2, 64], strides = [1, 1]} : vector<2x256xf32> to vector<2x64xf32>
    %106 = vector.extract_strided_slice %103 {offsets = [0, 128], sizes = [2, 64], strides = [1, 1]} : vector<2x256xf32> to vector<2x64xf32>
    %107 = vector.extract_strided_slice %103 {offsets = [0, 192], sizes = [2, 64], strides = [1, 1]} : vector<2x256xf32> to vector<2x64xf32>
    %108 = arith.mulf %105, %84 : vector<2x64xf32>
    %109 = arith.mulf %104, %106 : vector<2x64xf32>
    %110 = arith.addf %108, %109 : vector<2x64xf32>
    %111 = math.tanh %110 : vector<2x64xf32>
    %112 = arith.mulf %107, %111 : vector<2x64xf32>
    %113 = vector.extract_strided_slice %112 {offsets = [0, 0], sizes = [2, 32], strides = [1, 1]} : vector<2x64xf32> to vector<2x32xf32>
    %c4 = arith.constant 4 : index
    %c0_27 = arith.constant 0 : index
    %114 = vector.load %arg10[%c4, %c0_27] : memref<16x32xf32, #tpu.memory_space<vmem>>, vector<2x32xf32>
    tpu.vector_store %arg10[%c4, %c0_27], %113 {strides = array<i32>} : memref<16x32xf32, #tpu.memory_space<vmem>>, vector<2x32xf32>,
    %115 = vector.extract_strided_slice %112 {offsets = [0, 32], sizes = [2, 32], strides = [1, 1]} : vector<2x64xf32> to vector<2x32xf32>
    %c10 = arith.constant 10 : index
    %c0_28 = arith.constant 0 : index
    %116 = vector.load %arg11[%c10, %c0_28] : memref<16x32xf32, #tpu.memory_space<vmem>>, vector<2x32xf32>
    tpu.vector_store %arg11[%c10, %c0_28], %115 {strides = array<i32>} : memref<16x32xf32, #tpu.memory_space<vmem>>, vector<2x32xf32>,
    %117 = vector.extract_strided_slice %36 {offsets = [6, 0], sizes = [2, 256], strides = [1, 1]} : vector<16x256xf32> to vector<2x256xf32>
    %118 = vector.extract_strided_slice %36 {offsets = [8, 0], sizes = [2, 256], strides = [1, 1]} : vector<16x256xf32> to vector<2x256xf32>
    %119 = arith.select %18, %117, %118 : vector<2x256xi1>, vector<2x256xf32>
    %cst_29 = arith.constant dense<0.000000e+00> : vector<2x256xf32>
    %120 = tpu.matmul %112, %31, %cst_29 {dimension_numbers = #tpu.dot_dimension_numbers<[1], [0], [0], [1], [0, 0, 1, 1], [], []>} : vector<2x64xf32>, vector<64x256xf32>, vector<2x256xf32> -> vector<2x256xf32>
    %121 = arith.addf %119, %120 : vector<2x256xf32>
    %122 = arith.mulf %121, %26 : vector<2x256xf32>
    %123 = arith.negf %122 : vector<2x256xf32>
    %124 = math.exp %123 : vector<2x256xf32>
    %cst_30 = arith.constant 1.000000e+00 : f32
    %125 = vector.broadcast %cst_30 : f32 to vector<2x256xf32>
    %126 = arith.addf %125, %124 : vector<2x256xf32>
    %127 = arith.divf %125, %126 : vector<2x256xf32>
    %128 = arith.mulf %127, %26 : vector<2x256xf32>
    %129 = arith.subf %128, %29 : vector<2x256xf32>
    %130 = vector.extract_strided_slice %129 {offsets = [0, 0], sizes = [2, 64], strides = [1, 1]} : vector<2x256xf32> to vector<2x64xf32>
    %131 = vector.extract_strided_slice %129 {offsets = [0, 64], sizes = [2, 64], strides = [1, 1]} : vector<2x256xf32> to vector<2x64xf32>
    %132 = vector.extract_strided_slice %129 {offsets = [0, 128], sizes = [2, 64], strides = [1, 1]} : vector<2x256xf32> to vector<2x64xf32>
    %133 = vector.extract_strided_slice %129 {offsets = [0, 192], sizes = [2, 64], strides = [1, 1]} : vector<2x256xf32> to vector<2x64xf32>
    %134 = arith.mulf %131, %110 : vector<2x64xf32>
    %135 = arith.mulf %130, %132 : vector<2x64xf32>
    %136 = arith.addf %134, %135 : vector<2x64xf32>
    %137 = math.tanh %136 : vector<2x64xf32>
    %138 = arith.mulf %133, %137 : vector<2x64xf32>
    %139 = vector.extract_strided_slice %138 {offsets = [0, 0], sizes = [2, 32], strides = [1, 1]} : vector<2x64xf32> to vector<2x32xf32>
    %c6 = arith.constant 6 : index
    %c0_31 = arith.constant 0 : index
    %140 = vector.load %arg10[%c6, %c0_31] : memref<16x32xf32, #tpu.memory_space<vmem>>, vector<2x32xf32>
    tpu.vector_store %arg10[%c6, %c0_31], %139 {strides = array<i32>} : memref<16x32xf32, #tpu.memory_space<vmem>>, vector<2x32xf32>,
    %141 = vector.extract_strided_slice %138 {offsets = [0, 32], sizes = [2, 32], strides = [1, 1]} : vector<2x64xf32> to vector<2x32xf32>
    %c8 = arith.constant 8 : index
    %c0_32 = arith.constant 0 : index
    %142 = vector.load %arg11[%c8, %c0_32] : memref<16x32xf32, #tpu.memory_space<vmem>>, vector<2x32xf32>
    tpu.vector_store %arg11[%c8, %c0_32], %141 {strides = array<i32>} : memref<16x32xf32, #tpu.memory_space<vmem>>, vector<2x32xf32>,
    %143 = vector.extract_strided_slice %36 {offsets = [8, 0], sizes = [2, 256], strides = [1, 1]} : vector<16x256xf32> to vector<2x256xf32>
    %144 = vector.extract_strided_slice %36 {offsets = [6, 0], sizes = [2, 256], strides = [1, 1]} : vector<16x256xf32> to vector<2x256xf32>
    %145 = arith.select %18, %143, %144 : vector<2x256xi1>, vector<2x256xf32>
    %cst_33 = arith.constant dense<0.000000e+00> : vector<2x256xf32>
    %146 = tpu.matmul %138, %31, %cst_33 {dimension_numbers = #tpu.dot_dimension_numbers<[1], [0], [0], [1], [0, 0, 1, 1], [], []>} : vector<2x64xf32>, vector<64x256xf32>, vector<2x256xf32> -> vector<2x256xf32>
    %147 = arith.addf %145, %146 : vector<2x256xf32>
    %148 = arith.mulf %147, %26 : vector<2x256xf32>
    %149 = arith.negf %148 : vector<2x256xf32>
    %150 = math.exp %149 : vector<2x256xf32>
    %cst_34 = arith.constant 1.000000e+00 : f32
    %151 = vector.broadcast %cst_34 : f32 to vector<2x256xf32>
    %152 = arith.addf %151, %150 : vector<2x256xf32>
    %153 = arith.divf %151, %152 : vector<2x256xf32>
    %154 = arith.mulf %153, %26 : vector<2x256xf32>
    %155 = arith.subf %154, %29 : vector<2x256xf32>
    %156 = vector.extract_strided_slice %155 {offsets = [0, 0], sizes = [2, 64], strides = [1, 1]} : vector<2x256xf32> to vector<2x64xf32>
    %157 = vector.extract_strided_slice %155 {offsets = [0, 64], sizes = [2, 64], strides = [1, 1]} : vector<2x256xf32> to vector<2x64xf32>
    %158 = vector.extract_strided_slice %155 {offsets = [0, 128], sizes = [2, 64], strides = [1, 1]} : vector<2x256xf32> to vector<2x64xf32>
    %159 = vector.extract_strided_slice %155 {offsets = [0, 192], sizes = [2, 64], strides = [1, 1]} : vector<2x256xf32> to vector<2x64xf32>
    %160 = arith.mulf %157, %136 : vector<2x64xf32>
    %161 = arith.mulf %156, %158 : vector<2x64xf32>
    %162 = arith.addf %160, %161 : vector<2x64xf32>
    %163 = math.tanh %162 : vector<2x64xf32>
    %164 = arith.mulf %159, %163 : vector<2x64xf32>
    %165 = vector.extract_strided_slice %164 {offsets = [0, 0], sizes = [2, 32], strides = [1, 1]} : vector<2x64xf32> to vector<2x32xf32>
    %c8_35 = arith.constant 8 : index
    %c0_36 = arith.constant 0 : index
    %166 = vector.load %arg10[%c8_35, %c0_36] : memref<16x32xf32, #tpu.memory_space<vmem>>, vector<2x32xf32>
    tpu.vector_store %arg10[%c8_35, %c0_36], %165 {strides = array<i32>} : memref<16x32xf32, #tpu.memory_space<vmem>>, vector<2x32xf32>,
    %167 = vector.extract_strided_slice %164 {offsets = [0, 32], sizes = [2, 32], strides = [1, 1]} : vector<2x64xf32> to vector<2x32xf32>
    %c6_37 = arith.constant 6 : index
    %c0_38 = arith.constant 0 : index
    %168 = vector.load %arg11[%c6_37, %c0_38] : memref<16x32xf32, #tpu.memory_space<vmem>>, vector<2x32xf32>
    tpu.vector_store %arg11[%c6_37, %c0_38], %167 {strides = array<i32>} : memref<16x32xf32, #tpu.memory_space<vmem>>, vector<2x32xf32>,
    %169 = vector.extract_strided_slice %36 {offsets = [10, 0], sizes = [2, 256], strides = [1, 1]} : vector<16x256xf32> to vector<2x256xf32>
    %170 = vector.extract_strided_slice %36 {offsets = [4, 0], sizes = [2, 256], strides = [1, 1]} : vector<16x256xf32> to vector<2x256xf32>
    %171 = arith.select %18, %169, %170 : vector<2x256xi1>, vector<2x256xf32>
    %cst_39 = arith.constant dense<0.000000e+00> : vector<2x256xf32>
    %172 = tpu.matmul %164, %31, %cst_39 {dimension_numbers = #tpu.dot_dimension_numbers<[1], [0], [0], [1], [0, 0, 1, 1], [], []>} : vector<2x64xf32>, vector<64x256xf32>, vector<2x256xf32> -> vector<2x256xf32>
    %173 = arith.addf %171, %172 : vector<2x256xf32>
    %174 = arith.mulf %173, %26 : vector<2x256xf32>
    %175 = arith.negf %174 : vector<2x256xf32>
    %176 = math.exp %175 : vector<2x256xf32>
    %cst_40 = arith.constant 1.000000e+00 : f32
    %177 = vector.broadcast %cst_40 : f32 to vector<2x256xf32>
    %178 = arith.addf %177, %176 : vector<2x256xf32>
    %179 = arith.divf %177, %178 : vector<2x256xf32>
    %180 = arith.mulf %179, %26 : vector<2x256xf32>
    %181 = arith.subf %180, %29 : vector<2x256xf32>
    %182 = vector.extract_strided_slice %181 {offsets = [0, 0], sizes = [2, 64], strides = [1, 1]} : vector<2x256xf32> to vector<2x64xf32>
    %183 = vector.extract_strided_slice %181 {offsets = [0, 64], sizes = [2, 64], strides = [1, 1]} : vector<2x256xf32> to vector<2x64xf32>
    %184 = vector.extract_strided_slice %181 {offsets = [0, 128], sizes = [2, 64], strides = [1, 1]} : vector<2x256xf32> to vector<2x64xf32>
    %185 = vector.extract_strided_slice %181 {offsets = [0, 192], sizes = [2, 64], strides = [1, 1]} : vector<2x256xf32> to vector<2x64xf32>
    %186 = arith.mulf %183, %162 : vector<2x64xf32>
    %187 = arith.mulf %182, %184 : vector<2x64xf32>
    %188 = arith.addf %186, %187 : vector<2x64xf32>
    %189 = math.tanh %188 : vector<2x64xf32>
    %190 = arith.mulf %185, %189 : vector<2x64xf32>
    %191 = vector.extract_strided_slice %190 {offsets = [0, 0], sizes = [2, 32], strides = [1, 1]} : vector<2x64xf32> to vector<2x32xf32>
    %c10_41 = arith.constant 10 : index
    %c0_42 = arith.constant 0 : index
    %192 = vector.load %arg10[%c10_41, %c0_42] : memref<16x32xf32, #tpu.memory_space<vmem>>, vector<2x32xf32>
    tpu.vector_store %arg10[%c10_41, %c0_42], %191 {strides = array<i32>} : memref<16x32xf32, #tpu.memory_space<vmem>>, vector<2x32xf32>,
    %193 = vector.extract_strided_slice %190 {offsets = [0, 32], sizes = [2, 32], strides = [1, 1]} : vector<2x64xf32> to vector<2x32xf32>
    %c4_43 = arith.constant 4 : index
    %c0_44 = arith.constant 0 : index
    %194 = vector.load %arg11[%c4_43, %c0_44] : memref<16x32xf32, #tpu.memory_space<vmem>>, vector<2x32xf32>
    tpu.vector_store %arg11[%c4_43, %c0_44], %193 {strides = array<i32>} : memref<16x32xf32, #tpu.memory_space<vmem>>, vector<2x32xf32>,
    %195 = vector.extract_strided_slice %36 {offsets = [12, 0], sizes = [2, 256], strides = [1, 1]} : vector<16x256xf32> to vector<2x256xf32>
    %196 = vector.extract_strided_slice %36 {offsets = [2, 0], sizes = [2, 256], strides = [1, 1]} : vector<16x256xf32> to vector<2x256xf32>
    %197 = arith.select %18, %195, %196 : vector<2x256xi1>, vector<2x256xf32>
    %cst_45 = arith.constant dense<0.000000e+00> : vector<2x256xf32>
    %198 = tpu.matmul %190, %31, %cst_45 {dimension_numbers = #tpu.dot_dimension_numbers<[1], [0], [0], [1], [0, 0, 1, 1], [], []>} : vector<2x64xf32>, vector<64x256xf32>, vector<2x256xf32> -> vector<2x256xf32>
    %199 = arith.addf %197, %198 : vector<2x256xf32>
    %200 = arith.mulf %199, %26 : vector<2x256xf32>
    %201 = arith.negf %200 : vector<2x256xf32>
    %202 = math.exp %201 : vector<2x256xf32>
    %cst_46 = arith.constant 1.000000e+00 : f32
    %203 = vector.broadcast %cst_46 : f32 to vector<2x256xf32>
    %204 = arith.addf %203, %202 : vector<2x256xf32>
    %205 = arith.divf %203, %204 : vector<2x256xf32>
    %206 = arith.mulf %205, %26 : vector<2x256xf32>
    %207 = arith.subf %206, %29 : vector<2x256xf32>
    %208 = vector.extract_strided_slice %207 {offsets = [0, 0], sizes = [2, 64], strides = [1, 1]} : vector<2x256xf32> to vector<2x64xf32>
    %209 = vector.extract_strided_slice %207 {offsets = [0, 64], sizes = [2, 64], strides = [1, 1]} : vector<2x256xf32> to vector<2x64xf32>
    %210 = vector.extract_strided_slice %207 {offsets = [0, 128], sizes = [2, 64], strides = [1, 1]} : vector<2x256xf32> to vector<2x64xf32>
    %211 = vector.extract_strided_slice %207 {offsets = [0, 192], sizes = [2, 64], strides = [1, 1]} : vector<2x256xf32> to vector<2x64xf32>
    %212 = arith.mulf %209, %188 : vector<2x64xf32>
    %213 = arith.mulf %208, %210 : vector<2x64xf32>
    %214 = arith.addf %212, %213 : vector<2x64xf32>
    %215 = math.tanh %214 : vector<2x64xf32>
    %216 = arith.mulf %211, %215 : vector<2x64xf32>
    %217 = vector.extract_strided_slice %216 {offsets = [0, 0], sizes = [2, 32], strides = [1, 1]} : vector<2x64xf32> to vector<2x32xf32>
    %c12_47 = arith.constant 12 : index
    %c0_48 = arith.constant 0 : index
    %218 = vector.load %arg10[%c12_47, %c0_48] : memref<16x32xf32, #tpu.memory_space<vmem>>, vector<2x32xf32>
    tpu.vector_store %arg10[%c12_47, %c0_48], %217 {strides = array<i32>} : memref<16x32xf32, #tpu.memory_space<vmem>>, vector<2x32xf32>,
    %219 = vector.extract_strided_slice %216 {offsets = [0, 32], sizes = [2, 32], strides = [1, 1]} : vector<2x64xf32> to vector<2x32xf32>
    %c2_49 = arith.constant 2 : index
    %c0_50 = arith.constant 0 : index
    %220 = vector.load %arg11[%c2_49, %c0_50] : memref<16x32xf32, #tpu.memory_space<vmem>>, vector<2x32xf32>
    tpu.vector_store %arg11[%c2_49, %c0_50], %219 {strides = array<i32>} : memref<16x32xf32, #tpu.memory_space<vmem>>, vector<2x32xf32>,
    %221 = vector.extract_strided_slice %36 {offsets = [14, 0], sizes = [2, 256], strides = [1, 1]} : vector<16x256xf32> to vector<2x256xf32>
    %222 = vector.extract_strided_slice %36 {offsets = [0, 0], sizes = [2, 256], strides = [1, 1]} : vector<16x256xf32> to vector<2x256xf32>
    %223 = arith.select %18, %221, %222 : vector<2x256xi1>, vector<2x256xf32>
    %cst_51 = arith.constant dense<0.000000e+00> : vector<2x256xf32>
    %224 = tpu.matmul %216, %31, %cst_51 {dimension_numbers = #tpu.dot_dimension_numbers<[1], [0], [0], [1], [0, 0, 1, 1], [], []>} : vector<2x64xf32>, vector<64x256xf32>, vector<2x256xf32> -> vector<2x256xf32>
    %225 = arith.addf %223, %224 : vector<2x256xf32>
    %226 = arith.mulf %225, %26 : vector<2x256xf32>
    %227 = arith.negf %226 : vector<2x256xf32>
    %228 = math.exp %227 : vector<2x256xf32>
    %cst_52 = arith.constant 1.000000e+00 : f32
    %229 = vector.broadcast %cst_52 : f32 to vector<2x256xf32>
    %230 = arith.addf %229, %228 : vector<2x256xf32>
    %231 = arith.divf %229, %230 : vector<2x256xf32>
    %232 = arith.mulf %231, %26 : vector<2x256xf32>
    %233 = arith.subf %232, %29 : vector<2x256xf32>
    %234 = vector.extract_strided_slice %233 {offsets = [0, 0], sizes = [2, 64], strides = [1, 1]} : vector<2x256xf32> to vector<2x64xf32>
    %235 = vector.extract_strided_slice %233 {offsets = [0, 64], sizes = [2, 64], strides = [1, 1]} : vector<2x256xf32> to vector<2x64xf32>
    %236 = vector.extract_strided_slice %233 {offsets = [0, 128], sizes = [2, 64], strides = [1, 1]} : vector<2x256xf32> to vector<2x64xf32>
    %237 = vector.extract_strided_slice %233 {offsets = [0, 192], sizes = [2, 64], strides = [1, 1]} : vector<2x256xf32> to vector<2x64xf32>
    %238 = arith.mulf %235, %214 : vector<2x64xf32>
    %239 = arith.mulf %234, %236 : vector<2x64xf32>
    %240 = arith.addf %238, %239 : vector<2x64xf32>
    %241 = math.tanh %240 : vector<2x64xf32>
    %242 = arith.mulf %237, %241 : vector<2x64xf32>
    %243 = vector.extract_strided_slice %242 {offsets = [0, 0], sizes = [2, 32], strides = [1, 1]} : vector<2x64xf32> to vector<2x32xf32>
    %c14_53 = arith.constant 14 : index
    %c0_54 = arith.constant 0 : index
    %244 = vector.load %arg10[%c14_53, %c0_54] : memref<16x32xf32, #tpu.memory_space<vmem>>, vector<2x32xf32>
    tpu.vector_store %arg10[%c14_53, %c0_54], %243 {strides = array<i32>} : memref<16x32xf32, #tpu.memory_space<vmem>>, vector<2x32xf32>,
    %245 = vector.extract_strided_slice %242 {offsets = [0, 32], sizes = [2, 32], strides = [1, 1]} : vector<2x64xf32> to vector<2x32xf32>
    %c0_55 = arith.constant 0 : index
    %c0_56 = arith.constant 0 : index
    %246 = vector.load %arg11[%c0_55, %c0_56] : memref<16x32xf32, #tpu.memory_space<vmem>>, vector<2x32xf32>
    tpu.vector_store %arg11[%c0_55, %c0_56], %245 {strides = array<i32>} : memref<16x32xf32, #tpu.memory_space<vmem>>, vector<2x32xf32>,
    %c0_57 = arith.constant 0 : index
    %c0_58 = arith.constant 0 : index
    %247 = vector.load %arg10[%c0_57, %c0_58] : memref<16x32xf32, #tpu.memory_space<vmem>>, vector<16x32xf32>
    %c0_59 = arith.constant 0 : index
    %c0_60 = arith.constant 0 : index
    %248 = vector.load %arg11[%c0_59, %c0_60] : memref<16x32xf32, #tpu.memory_space<vmem>>, vector<16x32xf32>
    %c0_61 = arith.constant 0 : index
    %c0_62 = arith.constant 0 : index
    %249 = vector.load %arg5[%c0_61, %c0_62] : memref<64x256xf32, #tpu.memory_space<vmem>>, vector<64x256xf32>
    %c0_63 = arith.constant 0 : index
    %c0_64 = arith.constant 0 : index
    %250 = vector.load %arg6[%c0_63, %c0_64] : memref<1x256xf32, #tpu.memory_space<vmem>>, vector<1x256xf32>
    %c0_65 = arith.constant 0 : index
    %c0_66 = arith.constant 0 : index
    %251 = vector.load %arg4[%c0_65, %c0_66] : memref<64x256xf32, #tpu.memory_space<vmem>>, vector<64x256xf32>
    %252 = vector.extract_strided_slice %251 {offsets = [0, 0], sizes = [32, 256], strides = [1, 1]} : vector<64x256xf32> to vector<32x256xf32>
    %cst_67 = arith.constant dense<0.000000e+00> : vector<16x256xf32>
    %253 = tpu.matmul %247, %252, %cst_67 {dimension_numbers = #tpu.dot_dimension_numbers<[1], [0], [0], [1], [0, 0, 1, 1], [], []>} : vector<16x32xf32>, vector<32x256xf32>, vector<16x256xf32> -> vector<16x256xf32>
    %254 = vector.extract_strided_slice %251 {offsets = [32, 0], sizes = [32, 256], strides = [1, 1]} : vector<64x256xf32> to vector<32x256xf32>
    %cst_68 = arith.constant dense<0.000000e+00> : vector<16x256xf32>
    %255 = tpu.matmul %248, %254, %cst_68 {dimension_numbers = #tpu.dot_dimension_numbers<[1], [0], [0], [1], [0, 0, 1, 1], [], []>} : vector<16x32xf32>, vector<32x256xf32>, vector<16x256xf32> -> vector<16x256xf32>
    %256 = arith.addf %253, %255 : vector<16x256xf32>
    %257 = vector.broadcast %250 : vector<1x256xf32> to vector<16x256xf32>
    %258 = arith.addf %256, %257 : vector<16x256xf32>
    %cst_69 = arith.constant 0.000000e+00 : f32
    %259 = vector.broadcast %cst_69 : f32 to vector<2x64xf32>
    %cst_70 = arith.constant 0.000000e+00 : f32
    %260 = vector.broadcast %cst_70 : f32 to vector<2x64xf32>
    %cst_71 = arith.constant 0.000000e+00 : f32
    %261 = vector.broadcast %cst_71 : f32 to vector<2x64xf32>
    %262 = vector.extract_strided_slice %258 {offsets = [0, 0], sizes = [2, 256], strides = [1, 1]} : vector<16x256xf32> to vector<2x256xf32>
    %263 = vector.extract_strided_slice %258 {offsets = [14, 0], sizes = [2, 256], strides = [1, 1]} : vector<16x256xf32> to vector<2x256xf32>
    %264 = arith.select %18, %262, %263 : vector<2x256xi1>, vector<2x256xf32>
    %cst_72 = arith.constant dense<0.000000e+00> : vector<2x256xf32>
    %265 = tpu.matmul %259, %249, %cst_72 {dimension_numbers = #tpu.dot_dimension_numbers<[1], [0], [0], [1], [0, 0, 1, 1], [], []>} : vector<2x64xf32>, vector<64x256xf32>, vector<2x256xf32> -> vector<2x256xf32>
    %266 = arith.addf %264, %265 : vector<2x256xf32>
    %267 = arith.mulf %266, %26 : vector<2x256xf32>
    %268 = arith.negf %267 : vector<2x256xf32>
    %269 = math.exp %268 : vector<2x256xf32>
    %cst_73 = arith.constant 1.000000e+00 : f32
    %270 = vector.broadcast %cst_73 : f32 to vector<2x256xf32>
    %271 = arith.addf %270, %269 : vector<2x256xf32>
    %272 = arith.divf %270, %271 : vector<2x256xf32>
    %273 = arith.mulf %272, %26 : vector<2x256xf32>
    %274 = arith.subf %273, %29 : vector<2x256xf32>
    %275 = vector.extract_strided_slice %274 {offsets = [0, 0], sizes = [2, 64], strides = [1, 1]} : vector<2x256xf32> to vector<2x64xf32>
    %276 = vector.extract_strided_slice %274 {offsets = [0, 64], sizes = [2, 64], strides = [1, 1]} : vector<2x256xf32> to vector<2x64xf32>
    %277 = vector.extract_strided_slice %274 {offsets = [0, 128], sizes = [2, 64], strides = [1, 1]} : vector<2x256xf32> to vector<2x64xf32>
    %278 = vector.extract_strided_slice %274 {offsets = [0, 192], sizes = [2, 64], strides = [1, 1]} : vector<2x256xf32> to vector<2x64xf32>
    %279 = arith.mulf %276, %260 : vector<2x64xf32>
    %280 = arith.mulf %275, %277 : vector<2x64xf32>
    %281 = arith.addf %279, %280 : vector<2x64xf32>
    %282 = math.tanh %281 : vector<2x64xf32>
    %283 = arith.mulf %278, %282 : vector<2x64xf32>
    %284 = arith.addf %261, %283 : vector<2x64xf32>
    %285 = vector.extract_strided_slice %258 {offsets = [2, 0], sizes = [2, 256], strides = [1, 1]} : vector<16x256xf32> to vector<2x256xf32>
    %286 = vector.extract_strided_slice %258 {offsets = [12, 0], sizes = [2, 256], strides = [1, 1]} : vector<16x256xf32> to vector<2x256xf32>
    %287 = arith.select %18, %285, %286 : vector<2x256xi1>, vector<2x256xf32>
    %cst_74 = arith.constant dense<0.000000e+00> : vector<2x256xf32>
    %288 = tpu.matmul %283, %249, %cst_74 {dimension_numbers = #tpu.dot_dimension_numbers<[1], [0], [0], [1], [0, 0, 1, 1], [], []>} : vector<2x64xf32>, vector<64x256xf32>, vector<2x256xf32> -> vector<2x256xf32>
    %289 = arith.addf %287, %288 : vector<2x256xf32>
    %290 = arith.mulf %289, %26 : vector<2x256xf32>
    %291 = arith.negf %290 : vector<2x256xf32>
    %292 = math.exp %291 : vector<2x256xf32>
    %cst_75 = arith.constant 1.000000e+00 : f32
    %293 = vector.broadcast %cst_75 : f32 to vector<2x256xf32>
    %294 = arith.addf %293, %292 : vector<2x256xf32>
    %295 = arith.divf %293, %294 : vector<2x256xf32>
    %296 = arith.mulf %295, %26 : vector<2x256xf32>
    %297 = arith.subf %296, %29 : vector<2x256xf32>
    %298 = vector.extract_strided_slice %297 {offsets = [0, 0], sizes = [2, 64], strides = [1, 1]} : vector<2x256xf32> to vector<2x64xf32>
    %299 = vector.extract_strided_slice %297 {offsets = [0, 64], sizes = [2, 64], strides = [1, 1]} : vector<2x256xf32> to vector<2x64xf32>
    %300 = vector.extract_strided_slice %297 {offsets = [0, 128], sizes = [2, 64], strides = [1, 1]} : vector<2x256xf32> to vector<2x64xf32>
    %301 = vector.extract_strided_slice %297 {offsets = [0, 192], sizes = [2, 64], strides = [1, 1]} : vector<2x256xf32> to vector<2x64xf32>
    %302 = arith.mulf %299, %281 : vector<2x64xf32>
    %303 = arith.mulf %298, %300 : vector<2x64xf32>
    %304 = arith.addf %302, %303 : vector<2x64xf32>
    %305 = math.tanh %304 : vector<2x64xf32>
    %306 = arith.mulf %301, %305 : vector<2x64xf32>
    %307 = arith.addf %284, %306 : vector<2x64xf32>
    %308 = vector.extract_strided_slice %258 {offsets = [4, 0], sizes = [2, 256], strides = [1, 1]} : vector<16x256xf32> to vector<2x256xf32>
    %309 = vector.extract_strided_slice %258 {offsets = [10, 0], sizes = [2, 256], strides = [1, 1]} : vector<16x256xf32> to vector<2x256xf32>
    %310 = arith.select %18, %308, %309 : vector<2x256xi1>, vector<2x256xf32>
    %cst_76 = arith.constant dense<0.000000e+00> : vector<2x256xf32>
    %311 = tpu.matmul %306, %249, %cst_76 {dimension_numbers = #tpu.dot_dimension_numbers<[1], [0], [0], [1], [0, 0, 1, 1], [], []>} : vector<2x64xf32>, vector<64x256xf32>, vector<2x256xf32> -> vector<2x256xf32>
    %312 = arith.addf %310, %311 : vector<2x256xf32>
    %313 = arith.mulf %312, %26 : vector<2x256xf32>
    %314 = arith.negf %313 : vector<2x256xf32>
    %315 = math.exp %314 : vector<2x256xf32>
    %cst_77 = arith.constant 1.000000e+00 : f32
    %316 = vector.broadcast %cst_77 : f32 to vector<2x256xf32>
    %317 = arith.addf %316, %315 : vector<2x256xf32>
    %318 = arith.divf %316, %317 : vector<2x256xf32>
    %319 = arith.mulf %318, %26 : vector<2x256xf32>
    %320 = arith.subf %319, %29 : vector<2x256xf32>
    %321 = vector.extract_strided_slice %320 {offsets = [0, 0], sizes = [2, 64], strides = [1, 1]} : vector<2x256xf32> to vector<2x64xf32>
    %322 = vector.extract_strided_slice %320 {offsets = [0, 64], sizes = [2, 64], strides = [1, 1]} : vector<2x256xf32> to vector<2x64xf32>
    %323 = vector.extract_strided_slice %320 {offsets = [0, 128], sizes = [2, 64], strides = [1, 1]} : vector<2x256xf32> to vector<2x64xf32>
    %324 = vector.extract_strided_slice %320 {offsets = [0, 192], sizes = [2, 64], strides = [1, 1]} : vector<2x256xf32> to vector<2x64xf32>
    %325 = arith.mulf %322, %304 : vector<2x64xf32>
    %326 = arith.mulf %321, %323 : vector<2x64xf32>
    %327 = arith.addf %325, %326 : vector<2x64xf32>
    %328 = math.tanh %327 : vector<2x64xf32>
    %329 = arith.mulf %324, %328 : vector<2x64xf32>
    %330 = arith.addf %307, %329 : vector<2x64xf32>
    %331 = vector.extract_strided_slice %258 {offsets = [6, 0], sizes = [2, 256], strides = [1, 1]} : vector<16x256xf32> to vector<2x256xf32>
    %332 = vector.extract_strided_slice %258 {offsets = [8, 0], sizes = [2, 256], strides = [1, 1]} : vector<16x256xf32> to vector<2x256xf32>
    %333 = arith.select %18, %331, %332 : vector<2x256xi1>, vector<2x256xf32>
    %cst_78 = arith.constant dense<0.000000e+00> : vector<2x256xf32>
    %334 = tpu.matmul %329, %249, %cst_78 {dimension_numbers = #tpu.dot_dimension_numbers<[1], [0], [0], [1], [0, 0, 1, 1], [], []>} : vector<2x64xf32>, vector<64x256xf32>, vector<2x256xf32> -> vector<2x256xf32>
    %335 = arith.addf %333, %334 : vector<2x256xf32>
    %336 = arith.mulf %335, %26 : vector<2x256xf32>
    %337 = arith.negf %336 : vector<2x256xf32>
    %338 = math.exp %337 : vector<2x256xf32>
    %cst_79 = arith.constant 1.000000e+00 : f32
    %339 = vector.broadcast %cst_79 : f32 to vector<2x256xf32>
    %340 = arith.addf %339, %338 : vector<2x256xf32>
    %341 = arith.divf %339, %340 : vector<2x256xf32>
    %342 = arith.mulf %341, %26 : vector<2x256xf32>
    %343 = arith.subf %342, %29 : vector<2x256xf32>
    %344 = vector.extract_strided_slice %343 {offsets = [0, 0], sizes = [2, 64], strides = [1, 1]} : vector<2x256xf32> to vector<2x64xf32>
    %345 = vector.extract_strided_slice %343 {offsets = [0, 64], sizes = [2, 64], strides = [1, 1]} : vector<2x256xf32> to vector<2x64xf32>
    %346 = vector.extract_strided_slice %343 {offsets = [0, 128], sizes = [2, 64], strides = [1, 1]} : vector<2x256xf32> to vector<2x64xf32>
    %347 = vector.extract_strided_slice %343 {offsets = [0, 192], sizes = [2, 64], strides = [1, 1]} : vector<2x256xf32> to vector<2x64xf32>
    %348 = arith.mulf %345, %327 : vector<2x64xf32>
    %349 = arith.mulf %344, %346 : vector<2x64xf32>
    %350 = arith.addf %348, %349 : vector<2x64xf32>
    %351 = math.tanh %350 : vector<2x64xf32>
    %352 = arith.mulf %347, %351 : vector<2x64xf32>
    %353 = arith.addf %330, %352 : vector<2x64xf32>
    %354 = vector.extract_strided_slice %258 {offsets = [8, 0], sizes = [2, 256], strides = [1, 1]} : vector<16x256xf32> to vector<2x256xf32>
    %355 = vector.extract_strided_slice %258 {offsets = [6, 0], sizes = [2, 256], strides = [1, 1]} : vector<16x256xf32> to vector<2x256xf32>
    %356 = arith.select %18, %354, %355 : vector<2x256xi1>, vector<2x256xf32>
    %cst_80 = arith.constant dense<0.000000e+00> : vector<2x256xf32>
    %357 = tpu.matmul %352, %249, %cst_80 {dimension_numbers = #tpu.dot_dimension_numbers<[1], [0], [0], [1], [0, 0, 1, 1], [], []>} : vector<2x64xf32>, vector<64x256xf32>, vector<2x256xf32> -> vector<2x256xf32>
    %358 = arith.addf %356, %357 : vector<2x256xf32>
    %359 = arith.mulf %358, %26 : vector<2x256xf32>
    %360 = arith.negf %359 : vector<2x256xf32>
    %361 = math.exp %360 : vector<2x256xf32>
    %cst_81 = arith.constant 1.000000e+00 : f32
    %362 = vector.broadcast %cst_81 : f32 to vector<2x256xf32>
    %363 = arith.addf %362, %361 : vector<2x256xf32>
    %364 = arith.divf %362, %363 : vector<2x256xf32>
    %365 = arith.mulf %364, %26 : vector<2x256xf32>
    %366 = arith.subf %365, %29 : vector<2x256xf32>
    %367 = vector.extract_strided_slice %366 {offsets = [0, 0], sizes = [2, 64], strides = [1, 1]} : vector<2x256xf32> to vector<2x64xf32>
    %368 = vector.extract_strided_slice %366 {offsets = [0, 64], sizes = [2, 64], strides = [1, 1]} : vector<2x256xf32> to vector<2x64xf32>
    %369 = vector.extract_strided_slice %366 {offsets = [0, 128], sizes = [2, 64], strides = [1, 1]} : vector<2x256xf32> to vector<2x64xf32>
    %370 = vector.extract_strided_slice %366 {offsets = [0, 192], sizes = [2, 64], strides = [1, 1]} : vector<2x256xf32> to vector<2x64xf32>
    %371 = arith.mulf %368, %350 : vector<2x64xf32>
    %372 = arith.mulf %367, %369 : vector<2x64xf32>
    %373 = arith.addf %371, %372 : vector<2x64xf32>
    %374 = math.tanh %373 : vector<2x64xf32>
    %375 = arith.mulf %370, %374 : vector<2x64xf32>
    %376 = arith.addf %353, %375 : vector<2x64xf32>
    %377 = vector.extract_strided_slice %258 {offsets = [10, 0], sizes = [2, 256], strides = [1, 1]} : vector<16x256xf32> to vector<2x256xf32>
    %378 = vector.extract_strided_slice %258 {offsets = [4, 0], sizes = [2, 256], strides = [1, 1]} : vector<16x256xf32> to vector<2x256xf32>
    %379 = arith.select %18, %377, %378 : vector<2x256xi1>, vector<2x256xf32>
    %cst_82 = arith.constant dense<0.000000e+00> : vector<2x256xf32>
    %380 = tpu.matmul %375, %249, %cst_82 {dimension_numbers = #tpu.dot_dimension_numbers<[1], [0], [0], [1], [0, 0, 1, 1], [], []>} : vector<2x64xf32>, vector<64x256xf32>, vector<2x256xf32> -> vector<2x256xf32>
    %381 = arith.addf %379, %380 : vector<2x256xf32>
    %382 = arith.mulf %381, %26 : vector<2x256xf32>
    %383 = arith.negf %382 : vector<2x256xf32>
    %384 = math.exp %383 : vector<2x256xf32>
    %cst_83 = arith.constant 1.000000e+00 : f32
    %385 = vector.broadcast %cst_83 : f32 to vector<2x256xf32>
    %386 = arith.addf %385, %384 : vector<2x256xf32>
    %387 = arith.divf %385, %386 : vector<2x256xf32>
    %388 = arith.mulf %387, %26 : vector<2x256xf32>
    %389 = arith.subf %388, %29 : vector<2x256xf32>
    %390 = vector.extract_strided_slice %389 {offsets = [0, 0], sizes = [2, 64], strides = [1, 1]} : vector<2x256xf32> to vector<2x64xf32>
    %391 = vector.extract_strided_slice %389 {offsets = [0, 64], sizes = [2, 64], strides = [1, 1]} : vector<2x256xf32> to vector<2x64xf32>
    %392 = vector.extract_strided_slice %389 {offsets = [0, 128], sizes = [2, 64], strides = [1, 1]} : vector<2x256xf32> to vector<2x64xf32>
    %393 = vector.extract_strided_slice %389 {offsets = [0, 192], sizes = [2, 64], strides = [1, 1]} : vector<2x256xf32> to vector<2x64xf32>
    %394 = arith.mulf %391, %373 : vector<2x64xf32>
    %395 = arith.mulf %390, %392 : vector<2x64xf32>
    %396 = arith.addf %394, %395 : vector<2x64xf32>
    %397 = math.tanh %396 : vector<2x64xf32>
    %398 = arith.mulf %393, %397 : vector<2x64xf32>
    %399 = arith.addf %376, %398 : vector<2x64xf32>
    %400 = vector.extract_strided_slice %258 {offsets = [12, 0], sizes = [2, 256], strides = [1, 1]} : vector<16x256xf32> to vector<2x256xf32>
    %401 = vector.extract_strided_slice %258 {offsets = [2, 0], sizes = [2, 256], strides = [1, 1]} : vector<16x256xf32> to vector<2x256xf32>
    %402 = arith.select %18, %400, %401 : vector<2x256xi1>, vector<2x256xf32>
    %cst_84 = arith.constant dense<0.000000e+00> : vector<2x256xf32>
    %403 = tpu.matmul %398, %249, %cst_84 {dimension_numbers = #tpu.dot_dimension_numbers<[1], [0], [0], [1], [0, 0, 1, 1], [], []>} : vector<2x64xf32>, vector<64x256xf32>, vector<2x256xf32> -> vector<2x256xf32>
    %404 = arith.addf %402, %403 : vector<2x256xf32>
    %405 = arith.mulf %404, %26 : vector<2x256xf32>
    %406 = arith.negf %405 : vector<2x256xf32>
    %407 = math.exp %406 : vector<2x256xf32>
    %cst_85 = arith.constant 1.000000e+00 : f32
    %408 = vector.broadcast %cst_85 : f32 to vector<2x256xf32>
    %409 = arith.addf %408, %407 : vector<2x256xf32>
    %410 = arith.divf %408, %409 : vector<2x256xf32>
    %411 = arith.mulf %410, %26 : vector<2x256xf32>
    %412 = arith.subf %411, %29 : vector<2x256xf32>
    %413 = vector.extract_strided_slice %412 {offsets = [0, 0], sizes = [2, 64], strides = [1, 1]} : vector<2x256xf32> to vector<2x64xf32>
    %414 = vector.extract_strided_slice %412 {offsets = [0, 64], sizes = [2, 64], strides = [1, 1]} : vector<2x256xf32> to vector<2x64xf32>
    %415 = vector.extract_strided_slice %412 {offsets = [0, 128], sizes = [2, 64], strides = [1, 1]} : vector<2x256xf32> to vector<2x64xf32>
    %416 = vector.extract_strided_slice %412 {offsets = [0, 192], sizes = [2, 64], strides = [1, 1]} : vector<2x256xf32> to vector<2x64xf32>
    %417 = arith.mulf %414, %396 : vector<2x64xf32>
    %418 = arith.mulf %413, %415 : vector<2x64xf32>
    %419 = arith.addf %417, %418 : vector<2x64xf32>
    %420 = math.tanh %419 : vector<2x64xf32>
    %421 = arith.mulf %416, %420 : vector<2x64xf32>
    %422 = arith.addf %399, %421 : vector<2x64xf32>
    %423 = vector.extract_strided_slice %258 {offsets = [14, 0], sizes = [2, 256], strides = [1, 1]} : vector<16x256xf32> to vector<2x256xf32>
    %424 = vector.extract_strided_slice %258 {offsets = [0, 0], sizes = [2, 256], strides = [1, 1]} : vector<16x256xf32> to vector<2x256xf32>
    %425 = arith.select %18, %423, %424 : vector<2x256xi1>, vector<2x256xf32>
    %cst_86 = arith.constant dense<0.000000e+00> : vector<2x256xf32>
    %426 = tpu.matmul %421, %249, %cst_86 {dimension_numbers = #tpu.dot_dimension_numbers<[1], [0], [0], [1], [0, 0, 1, 1], [], []>} : vector<2x64xf32>, vector<64x256xf32>, vector<2x256xf32> -> vector<2x256xf32>
    %427 = arith.addf %425, %426 : vector<2x256xf32>
    %428 = arith.mulf %427, %26 : vector<2x256xf32>
    %429 = arith.negf %428 : vector<2x256xf32>
    %430 = math.exp %429 : vector<2x256xf32>
    %cst_87 = arith.constant 1.000000e+00 : f32
    %431 = vector.broadcast %cst_87 : f32 to vector<2x256xf32>
    %432 = arith.addf %431, %430 : vector<2x256xf32>
    %433 = arith.divf %431, %432 : vector<2x256xf32>
    %434 = arith.mulf %433, %26 : vector<2x256xf32>
    %435 = arith.subf %434, %29 : vector<2x256xf32>
    %436 = vector.extract_strided_slice %435 {offsets = [0, 0], sizes = [2, 64], strides = [1, 1]} : vector<2x256xf32> to vector<2x64xf32>
    %437 = vector.extract_strided_slice %435 {offsets = [0, 64], sizes = [2, 64], strides = [1, 1]} : vector<2x256xf32> to vector<2x64xf32>
    %438 = vector.extract_strided_slice %435 {offsets = [0, 128], sizes = [2, 64], strides = [1, 1]} : vector<2x256xf32> to vector<2x64xf32>
    %439 = vector.extract_strided_slice %435 {offsets = [0, 192], sizes = [2, 64], strides = [1, 1]} : vector<2x256xf32> to vector<2x64xf32>
    %440 = arith.mulf %437, %419 : vector<2x64xf32>
    %441 = arith.mulf %436, %438 : vector<2x64xf32>
    %442 = arith.addf %440, %441 : vector<2x64xf32>
    %443 = math.tanh %442 : vector<2x64xf32>
    %444 = arith.mulf %439, %443 : vector<2x64xf32>
    %445 = arith.addf %422, %444 : vector<2x64xf32>
    %cst_88 = arith.constant 1.250000e-01 : f32
    %446 = vector.broadcast %cst_88 : f32 to vector<2x64xf32>
    %447 = arith.mulf %445, %446 : vector<2x64xf32>
    %c0_89 = arith.constant 0 : index
    %c0_90 = arith.constant 0 : index
    %448 = vector.load %arg7[%c0_89, %c0_90] : memref<64x5xf32, #tpu.memory_space<vmem>>, vector<64x5xf32>
    %cst_91 = arith.constant dense<0.000000e+00> : vector<2x5xf32>
    %449 = tpu.matmul %447, %448, %cst_91 {dimension_numbers = #tpu.dot_dimension_numbers<[1], [0], [0], [1], [0, 0, 1, 1], [], []>} : vector<2x64xf32>, vector<64x5xf32>, vector<2x5xf32> -> vector<2x5xf32>
    %c0_92 = arith.constant 0 : index
    %c0_93 = arith.constant 0 : index
    %450 = vector.load %arg8[%c0_92, %c0_93] : memref<1x5xf32, #tpu.memory_space<vmem>>, vector<1x5xf32>
    %451 = vector.broadcast %450 : vector<1x5xf32> to vector<2x5xf32>
    %452 = arith.addf %449, %451 : vector<2x5xf32>
    %c0_94 = arith.constant 0 : index
    %c0_95 = arith.constant 0 : index
    %453 = vector.load %arg9[%c0_94, %c0_95] : memref<2x5xf32, #tpu.memory_space<vmem>>, vector<2x5xf32>
    tpu.vector_store %arg9[%c0_94, %c0_95], %452 {strides = array<i32>} : memref<2x5xf32, #tpu.memory_space<vmem>>, vector<2x5xf32>,
    return
  }
}

</mosaic_0001>

<bundles_post_ra>
// kernel: action_recognition_lstm.1
= control target key start
LH: loop header
LB: loop body
LE: loop exit
PB: predicated region body
PF: predicated region fallthrough
CT: control target
= control target key end

     0   :  { %14 = vsyncpa [#allocation5], 0  ;;  %s3817_s0 = inlined_call_operand.vmem [shape: f32[16,16], index: 0, kind: input, shape index: {}]   ;;  %s3818_s1 = inlined_call_operand.hbm [shape: f32[16,256], index: 1, kind: input, shape index: {}]   ;;  %s3819_s2 = inlined_call_operand.hbm [shape: f32[64,256], index: 2, kind: input, shape index: {}]   ;;  %s3820_s3 = inlined_call_operand.vmem [shape: f32[1,256], index: 3, kind: input, shape index: {}]   ;;  %s3821_s4 = inlined_call_operand.vmem [shape: f32[64,256], index: 4, kind: input, shape index: {}]   ;;  %s3822_s5 = inlined_call_operand.hbm [shape: f32[64,256], index: 5, kind: input, shape index: {}]   ;;  %s3823_s6 = inlined_call_operand.vmem [shape: f32[1,256], index: 6, kind: input, shape index: {}]   ;;  %s3824_s7 = inlined_call_operand.vmem [shape: f32[64,5], index: 7, kind: input, shape index: {}]   ;;  %s3825_s8 = inlined_call_operand.vmem [shape: f32[1,5], index: 8, kind: input, shape index: {}]   ;;  %s3826_s9 = inlined_call_operand.hbm [shape: f32[2,5], index: 9, kind: output, shape index: {}]  }
   0x1   :  { %15 = vsyncpa [#allocation8], 0 }
   0x2   :  { %16 = vsyncpa [#allocation6], 0  ;;  %s3134_s30 = smov [#allocation7]   ;;  %s3135_s11 = smov [#allocation4]  }
   0x3   :  { %s36_s10 = sshll.u32 %s3134_s30, 4  ;;  %s24_s12 = sshll.u32 %s3135_s11, 4  ;;  %s37_s10 = int_to_ptr.vmem [resolvable:$true] %s36_s10  ;;  %s3196_s12 = int_to_ptr.vmem [resolvable:$true] %s24_s12 }
   0x4   :  { %s3040_s15 = scalar_lea.hbm %s3819_s2, 2048 }
   0x5   :  { %p3041_p0 = scmp.ne.s32.totalorder %s3819_s2, %s3040_s15  ;;  %p3044_p1 = scmp.lt.u32.totalorder %s3040_s15, %s3819_s2 }
   0x7   :  { %p3046_p2 = pnand %p3044_p1, %p3041_p0 }
   0x9   :  { %3049 = shalt.err (!%p3046_p2)
}
   0xa   :  { %s3050_s20 = scalar_lea.vmem %s37_s10, 2048  ;;  %p3055_p4 = scmp.lt.s32.totalorder %s37_s10, %s37_s10 }
   0xb   :  { %p3051_p3 = scmp.ne.s32.totalorder %s37_s10, %s3050_s20  ;;  %p3056_p5 = scmp.lt.s32.totalorder %s3050_s20, %s3050_s20 }
   0xd   :  { %p3057_p6 = por %p3056_p5, %p3055_p4 }
   0xf   :  { %p3058_p7 = pnand %p3057_p6, %p3051_p3 }
  0x11   :  { %3061 = shalt.err (!%p3058_p7)
}
  0x12   :  { %s3136_s21 = smov 256   ;;  %s3137_s22 = smov 16  }
  0x13   :  { %42 = dma.hbm_to_vmem [thread:$0]  %s3819_s2, 2048, %s37_s10, [#allocation8], %s3136_s21, %s3136_s21, %s3137_s22  }
  0x14   :  { %s3062_s27 = scalar_lea.hbm %s3818_s1, 512 }
  0x15   :  { %p3063_p8 = scmp.ne.s32.totalorder %s3818_s1, %s3062_s27  ;;  %p3066_p9 = scmp.lt.u32.totalorder %s3062_s27, %s3818_s1 }
  0x17   :  { %p3068_p10 = pnand %p3066_p9, %p3063_p8 }
  0x19   :  { %3071 = shalt.err (!%p3068_p10)
}
  0x1a   :  { %s3072_s13 = scalar_lea.vmem %s3196_s12, 512  ;;  %p3077_p12 = scmp.lt.s32.totalorder %s3196_s12, %s3196_s12 }
  0x1b   :  { %p3073_p11 = scmp.ne.s32.totalorder %s3196_s12, %s3072_s13  ;;  %p3078_p13 = scmp.lt.s32.totalorder %s3072_s13, %s3072_s13 }
  0x1d   :  { %p3079_p0 = por %p3078_p13, %p3077_p12 }
  0x1f   :  { %p3080_p1 = pnand %p3079_p0, %p3073_p11 }
  0x21   :  { %3083 = shalt.err (!%p3080_p1)
}
  0x22   :  { %30 = dma.hbm_to_vmem [thread:$0]  %s3818_s1, 512, %s3196_s12, [#allocation5], %s3136_s21, %s3136_s21, %s3137_s22  }
  0x23   :  { %s3138_s14 = smov [#allocation9]   ;;  %s3084_s18 = scalar_lea.hbm %s3822_s5, 2048 }
  0x24   :  { %s52_s15 = sshll.u32 %s3138_s14, 4  ;;  %p3085_p2 = scmp.ne.s32.totalorder %s3822_s5, %s3084_s18  ;;  %s53_s15 = int_to_ptr.vmem [resolvable:$true] %s52_s15 }
  0x25   :  { %p3088_p3 = scmp.lt.u32.totalorder %s3084_s18, %s3822_s5 }
  0x27   :  { %p3090_p4 = pnand %p3088_p3, %p3085_p2 }
  0x29   :  { %3093 = shalt.err (!%p3090_p4)
}
  0x2a   :  { %s3094_s25 = scalar_lea.vmem %s53_s15, 2048  ;;  %p3099_p6 = scmp.lt.s32.totalorder %s53_s15, %s53_s15 }
  0x2b   :  { %p3095_p5 = scmp.ne.s32.totalorder %s53_s15, %s3094_s25  ;;  %p3100_p7 = scmp.lt.s32.totalorder %s3094_s25, %s3094_s25 }
  0x2d   :  { %p3101_p8 = por %p3100_p7, %p3099_p6 }
  0x2f   :  { %p3102_p9 = pnand %p3101_p8, %p3095_p5 }
  0x31   :  { %3105 = shalt.err (!%p3102_p9)
}
  0x32   :  { %58 = dma.hbm_to_vmem [thread:$0]  %s3822_s5, 2048, %s53_s15, [#allocation8], %s3136_s21, %s3136_s21, %s3137_s22  }
  0x33   :  { %3128 = dma.done.wait [#allocation5], 512  }
  0x34   :  { %3129 = vsyncadd [#allocation5], 4294966784 }
  0x35   :  { %3130 = dma.done.wait [#allocation8], 4096  }
  0x36   :  { %3131 = vsyncadd [#allocation8], 4294963200  ;;  %v3139_v0 = vmov 0.0   ;;  %v133_v1 = vld [vmem:[#allocation4 + $0x8] sm:$0xff]  ;;  %v135_v2 = vld [vmem:[#allocation4 + $0x18] sm:$0xff]  ;;  %vm147_vm0 = vcmask 130048   ;;  %v74_v33 = vlaneseq }
  0x37   :  { %218 = vmatprep.mubr.f32.mxu0 %v3139_v0  ;;  %307 = vmatprep.mubr.f32.mxu1 %v3139_v0  ;;  %v116_v3 = vld [vmem:[#allocation7 + $0x8] sm:$0xff]  ;;  %v2576_v4 = vpack.c.bf16 %v135_v2, %v133_v1  ;;  %v118_v5 = vld [vmem:[#allocation7 + $0x18] sm:$0xff]  ;;  %v132_v6 = vld [vmem:[#allocation4] sm:$0xff]  ;;  %vm347_vm4 = vcmask 254976   ;;  %vm239_vm5 = vcmask 523264   ;;  %s3142_s28 = smov 32  }
  0x38   :  { %v134_v7 = vld [vmem:[#allocation4 + $0x10] sm:$0xff]  ;;  %v3250_v8 = vpack.c.bf16 %v118_v5, %v116_v3  ;;  %v115_v10 = vld [vmem:[#allocation7] sm:$0xff]  ;;  %v120_v13 = vld [vmem:[#allocation7 + $0x28] sm:$0xff]  ;;  %v3304_v34 = vshrl.u32 %v74_v33, 7  ;;  %v75_v35 = vand.u32 127, %v74_v33  ;;  %vm598_vm6 = vcmask 259076  }
  0x39   :  { %v2578_v9 = vpack.c.bf16 %v134_v7, %v132_v6  ;;  %v117_v11 = vld [vmem:[#allocation7 + $0x10] sm:$0xff]  ;;  %2577 = vmatprep.subr.bf16.mxu0 %v2576_v4  ;;  %v122_v14 = vld [vmem:[#allocation7 + $0x38] sm:$0xff]  ;;  %v119_v15 = vld [vmem:[#allocation7 + $0x20] sm:$0xff]  ;;  %vm474_vm7 = vcmask 257026   ;;  %vm722_vm8 = vcmask 261126   ;;  %vm1262_vm9 = vcmask 261120  }
  0x3a   :  { %v3252_v12 = vpack.c.bf16 %v117_v11, %v115_v10  ;;  %2581 = vmatprep.subr.bf16.mxu1 %v3250_v8  ;;  %v113_v16 = vld [vmem:[%s3817_s0] sm:$0xff]  ;;  %v3258_v17 = vpack.c.bf16 %v122_v14, %v120_v13  ;;  %v121_v18 = vld [vmem:[#allocation7 + $0x30] sm:$0xff]  ;;  %v124_v19 = vld [vmem:[#allocation7 + $0x48] sm:$0xff]  ;;  %v139_v36 = vsub.s32 0, %v3304_v34  ;;  %v143_v38 = vsub.s32 1, %v3304_v34 }
  0x3b   :  { %2579 = vmatpush1.bf16.msra.mxu0 %v2578_v9  ;;  %v3261_v20 = vpack.c.bf16 %v121_v18, %v119_v15  ;;  %v126_v21 = vld [vmem:[#allocation7 + $0x58] sm:$0xff]  ;;  %v123_v23 = vld [vmem:[#allocation7 + $0x40] sm:$0xff]  ;;  %v125_v24 = vld [vmem:[#allocation7 + $0x50] sm:$0xff]  ;;  %v76_v39 = vadd.s32 128, %v75_v35  ;;  %v81_v42 = vand.u32 63, %v75_v35  ;;  %v3140_v9 = vmov 1.0  }
  0x3c   :  { %2583 = vmatpush1.bf16.msra.mxu1 %v3252_v12  ;;  %2597 = vmatprep.subr.bf16.mxu0 %v3250_v8  ;;  %v3265_v22 = vpack.c.bf16 %v126_v21, %v124_v19  ;;  %v128_v25 = vld [vmem:[#allocation7 + $0x68] sm:$0xff]  ;;  %v130_v26 = vld [vmem:[#allocation7 + $0x78] sm:$0xff]  ;;  %v3274_v28 = vpack.c.bf16 %v125_v24, %v123_v23  ;;  %v127_v30 = vld [vmem:[#allocation7 + $0x60] sm:$0xff]  ;;  %vm3144_vm10 = vmmov 0   ;;  %vm2476_vm11 = vcmask 33792  }
  0x3d   :  { %2585 = vmatprep.subr.bf16.mxu1 %v3258_v17  ;;  %v114_v27 = vld [vmem:[%s3817_s0 + $0x8] sm:$0xff]  ;;  %v3278_v29 = vpack.c.bf16 %v130_v26, %v128_v25  ;;  %v129_v31 = vld [vmem:[#allocation7 + $0x70] sm:$0xff]  ;;  %v131_v37 = vld [vmem:[%s3820_s3] sm:$0x3]  ;;  %v88_v44 = vand.u32 63, %v76_v39  ;;  %vm3315_vm1 = vcmp.lt.s32.totalorder %v81_v42, 32 }
  0x3e   :  { %2494 = vmatmul.mubr.msk.f32.vlgmr.msra.gmra.mrb[0].mxu0 %vm147_vm0, %v113_v16  ;;  %v3284_v32 = vpack.c.bf16 %v129_v31, %v127_v30  ;;  %v140_v40 = vrot.slane %v131_v37, %v139_v36  ;;  %v144_v41 = vrot.slane %v131_v37, %v143_v38  ;;  %vm106_vm3 = vcmp.lt.s32.totalorder %v76_v39, 192  ;;  %s3141_s3 = smov 64  }
  0x3f   :  { %224 = vmatprep.mubr.f32.mxu0 %v3139_v0  ;;  %2599 = vmatpush1.bf16.msra.mxu0 %v3252_v12  ;;  %vm3319_vm2 = vcmp.lt.s32.totalorder %v88_v44, 32  ;;  %v3356_v10 = vsel %vm106_vm3, 2.0, %v3140_v9  ;;  %v3363_v26 = vsel %vm106_vm3, 1.0, %v3139_v0 }
  0x40   :  { %2587 = vmatpush1.bf16.msra.mxu1 %v3261_v20  ;;  %2601 = vmatprep.subr.bf16.mxu0 %v3258_v17 }
  0x41   :  { %2589 = vmatprep.subr.bf16.mxu1 %v3265_v22 }
  0x42   :  { %2495 = vmatmul.mubr.msk.f32.gmra.mrb[2].mxu0 %vm147_vm0, %v114_v27 }
  0x43   :  { %2603 = vmatpush1.bf16.msra.mxu0 %v3261_v20  ;;  %425 = vmatprep.mubr.f32.mxu0 %v3139_v0 }
  0x44   :  { %2591 = vmatpush1.bf16.msra.mxu1 %v3274_v28  ;;  %2605 = vmatprep.subr.bf16.mxu0 %v3265_v22 }
  0x45   :  { %2593 = vmatprep.subr.bf16.mxu1 %v3278_v29 }
  0x47   :  { %2607 = vmatpush1.bf16.msra.mxu0 %v3274_v28 }
  0x48   :  { %2595 = vmatpush1.bf16.msra.mxu1 %v3284_v32  ;;  %2609 = vmatprep.subr.bf16.mxu0 %v3278_v29 }
  0x49   :  { %2613 = vmatprep.subr.bf16.mxu1 %v3250_v8 }
  0x4b   :  { %308 = vmatmul.mubr.f32.vlgmr.msra.gmra.mrb[0].mxu1 %v3139_v0  ;;  %2611 = vmatpush1.bf16.msra.mxu0 %v3284_v32 }
  0x4c   :  { %2615 = vmatpush1.bf16.msra.mxu1 %v3252_v12  ;;  %549 = vmatprep.mubr.f32.mxu1 %v3139_v0 }
  0x4d   :  { %2617 = vmatprep.subr.bf16.mxu1 %v3258_v17  ;;  %2629 = vmatprep.subr.bf16.mxu0 %v3250_v8 }
  0x50   :  { %2619 = vmatpush1.bf16.msra.mxu1 %v3261_v20 }
  0x51   :  { %2621 = vmatprep.subr.bf16.mxu1 %v3265_v22 }
  0x54   :  { %2623 = vmatpush1.bf16.msra.mxu1 %v3274_v28 }
  0x55   :  { %2625 = vmatprep.subr.bf16.mxu1 %v3278_v29 }
  0x58   :  { %2627 = vmatpush1.bf16.msra.mxu1 %v3284_v32 }
  0x59   :  { %2645 = vmatprep.subr.bf16.mxu1 %v3250_v8 }
 0x111   :  { %v220_v43 = vpop.f32.mrb[0].mxu0 }
 0x112   :  { %v221_v45 = vadd.f32 %v220_v43, %v140_v40  ;;  %v222_v46 = vpop.f32.mrb[1].mxu0 }
 0x113   :  { %v223_v47 = vadd.f32 %v222_v46, %v144_v41 }
 0x114   :  { %v730_v48 = vrot.slane %v221_v45, 6  ;;  %v853_v49 = vrot.slane %v221_v45, 2 }
 0x115   :  { %v226_v51 = vpop.f32.mrb[2].mxu0  ;;  %v731_v52 = vrot.slane %v223_v47, 6  ;;  %v854_v53 = vrot.slane %v223_v47, 2 }
 0x116   :  { %v227_v55 = vadd.f32 %v226_v51, %v140_v40  ;;  %v228_v56 = vpop.f32.mrb[3].mxu0 }
 0x117   :  { %v229_v57 = vadd.f32 %v228_v56, %v144_v41 }
 0x118   :  { %v233_v58 = vrot.slane %v227_v55, 6  ;;  %v353_v59 = vrot.slane %v227_v55, 2  ;;  %v3325_v60 = vsel %vm3315_vm1, %v227_v55, %v730_v48  ;;  %v3329_v61 = vsel %vm3315_vm1, %v227_v55, %v853_v49 }
 0x119   :  { %v234_v62 = vrot.slane %v229_v57, 6  ;;  %v354_v63 = vrot.slane %v229_v57, 2  ;;  %v3333_v1 = vsel %vm3319_vm2, %v229_v57, %v731_v52  ;;  %v3337_v2 = vsel %vm3319_vm2, %v229_v57, %v854_v53 }
 0x11a   :  { %v3341_v3 = vsel %vm3315_vm1, %v221_v45, %v233_v58  ;;  %v3345_v4 = vsel %vm3315_vm1, %v221_v45, %v353_v59 }
 0x11b   :  { %v3349_v5 = vsel %vm3319_vm2, %v223_v47, %v234_v62  ;;  %v3353_v6 = vsel %vm3319_vm2, %v223_v47, %v354_v63 }
 0x11e   :  { %v309_v7 = vpop.f32.mrb[0].mxu1 }
 0x11f   :  { %v314_v11 = vadd.f32 %v309_v7, %v3341_v3  ;;  %v311_v13 = vpop.f32.mrb[1].mxu1 }
 0x120   :  { %v315_v14 = vadd.f32 %v311_v13, %v3349_v5 }
 0x121   :  { %v2496_v15 = vmul.f32 -1.442695, %v314_v11 }
 0x122   :  { %v317_v16 = vmul.f32 %v315_v14, %v3356_v10 }
 0x123   :  { %2880 = vpow2.f32 %v2496_v15 }
 0x124   :  { %v2497_v18 = vmul.f32 -1.442695, %v317_v16 }
 0x126   :  { %2882 = vpow2.f32 %v2497_v18 }
 0x12d   :  { %v2881_v19 = vpop.eup %2880 }
 0x12e   :  { %v324_v24 = vadd.f32 1.0, %v2881_v19 }
 0x130   :  { %v2883_v21 = vpop.eup %2882 }
 0x131   :  { %v325_v23 = vadd.f32 1.0, %v2883_v21 }
 0x133   :  { %2884 = vrcp.f32 %v325_v23 }
 0x134   :  { %2886 = vrcp.f32 %v324_v24 }
 0x13d   :  { %v2885_v25 = vpop.eup %2884 }
 0x13e   :  { %v331_v27 = vmul.f32 %v2885_v25, %v3356_v10  ;;  %v2887_v31 = vpop.eup %2886 }
 0x13f   :  { %v334_v35 = vmul.f32 0.0, %v2887_v31 }
 0x140   :  { %v333_v30 = vsub.f32 %v331_v27, %v3363_v26 }
 0x142   :  { %v335_v33 = vmul.f32 %v2887_v31, %v333_v30 }
 0x144   :  { %337 = vrot.lane.b32.xlu0 %v335_v33, %s3141_s3 }
 0x1b6   :  { %v338_v37 = vpop.permute.xlu0 %337 }
 0x1b7   :  { %v340_v40 = vadd.f32 %v338_v37, %v334_v35 }
 0x1b9   :  { %2888 = vtanh.f32 %v340_v40  ;;  %v459_v58 = vrot.slane %v340_v40, 6 }
 0x1c3   :  { %v2889_v41 = vpop.eup %2888 }
 0x1c4   :  { %v3368_v42 = vmul.f32 %v2889_v41, %v333_v30 }
 0x1c6   :  { %344 = vrot.lane.b32.xlu0 %v3368_v42, %s3141_s3 }
 0x238   :  { %v345_v39 = vpop.permute.xlu0 %344 }
 0x239   :  { %348 = vst.msk [vmem:[#allocation2] sm:$0x3] %vm347_vm4, %v345_v39  ;;  %2498 = vmatmul.mubr.msk.f32.vlgmr.msra.gmra.mrb[4].mxu0 %vm239_vm5, %v345_v39 }
 0x23a   :  { %2631 = vmatpush1.bf16.msra.mxu0 %v3252_v12  ;;  %673 = vmatprep.mubr.f32.mxu0 %v3139_v0 }
 0x23b   :  { %2633 = vmatprep.subr.bf16.mxu0 %v3258_v17 }
 0x23e   :  { %2635 = vmatpush1.bf16.msra.mxu0 %v3261_v20 }
 0x23f   :  { %2637 = vmatprep.subr.bf16.mxu0 %v3265_v22 }
 0x242   :  { %2639 = vmatpush1.bf16.msra.mxu0 %v3274_v28 }
 0x243   :  { %2641 = vmatprep.subr.bf16.mxu0 %v3278_v29 }
 0x246   :  { %2643 = vmatpush1.bf16.msra.mxu0 %v3284_v32 }
 0x247   :  { %2661 = vmatprep.subr.bf16.mxu0 %v3250_v8 }
 0x30c   :  { %v427_v43 = vpop.f32.mrb[4].mxu0 }
 0x30d   :  { %v434_v44 = vrot.slane %v427_v43, 6  ;;  %v429_v45 = vpop.f32.mrb[5].mxu0 }
 0x30e   :  { %v435_v46 = vrot.slane %v429_v45, 6 }
 0x30f   :  { %v438_v47 = vadd.f32 %v434_v44, %v3345_v4 }
 0x310   :  { %v439_v48 = vadd.f32 %v435_v46, %v3353_v6 }
 0x311   :  { %v2499_v49 = vmul.f32 -1.442695, %v438_v47 }
 0x312   :  { %v441_v51 = vmul.f32 %v439_v48, %v3356_v10 }
 0x313   :  { %2890 = vpow2.f32 %v2499_v49 }
 0x314   :  { %v2500_v52 = vmul.f32 -1.442695, %v441_v51 }
 0x316   :  { %2892 = vpow2.f32 %v2500_v52 }
 0x31d   :  { %v2891_v53 = vpop.eup %2890 }
 0x31e   :  { %v448_v55 = vadd.f32 1.0, %v2891_v53 }
 0x320   :  { %v2893_v56 = vpop.eup %2892  ;;  %2894 = vrcp.f32 %v448_v55 }
 0x321   :  { %v449_v57 = vadd.f32 1.0, %v2893_v56 }
 0x323   :  { %2896 = vrcp.f32 %v449_v57 }
 0x32a   :  { %v2895_v59 = vpop.eup %2894 }
 0x32b   :  { %v461_v62 = vmul.f32 %v2895_v59, %v459_v58 }
 0x32d   :  { %v2897_v63 = vpop.eup %2896 }
 0x32e   :  { %v455_v7 = vmul.f32 %v2897_v63, %v3356_v10 }
 0x330   :  { %v457_v9 = vsub.f32 %v455_v7, %v3363_v26 }
 0x332   :  { %v462_v11 = vmul.f32 %v2895_v59, %v457_v9 }
 0x334   :  { %464 = vrot.lane.b32.xlu1 %v462_v11, %s3141_s3 }
 0x3a6   :  { %v465_v13 = vpop.permute.xlu1 %464 }
 0x3a7   :  { %v467_v14 = vadd.f32 %v465_v13, %v461_v62 }
 0x3a9   :  { %2898 = vtanh.f32 %v467_v14  ;;  %v583_v43 = vrot.slane %v467_v14, 6 }
 0x3b3   :  { %v2899_v15 = vpop.eup %2898 }
 0x3b4   :  { %v3389_v16 = vmul.f32 %v2899_v15, %v457_v9 }
 0x3b6   :  { %v480_v18 = vrot.slane %v3389_v16, 2 }
 0x3b8   :  { %481 = vrot.lane.b32.xlu1 %v480_v18, %s3141_s3 }
 0x42a   :  { %v482_v19 = vpop.permute.xlu1 %481 }
 0x42b   :  { %2501 = vmatmul.mubr.msk.f32.vlgmr.msra.gmra.mrb[2].mxu1 %vm239_vm5, %v482_v19 }
 0x42c   :  { %2647 = vmatpush1.bf16.msra.mxu1 %v3252_v12  ;;  %805 = vmatprep.mubr.f32.mxu1 %v3139_v0 }
 0x42d   :  { %2649 = vmatprep.subr.bf16.mxu1 %v3258_v17 }
 0x430   :  { %2651 = vmatpush1.bf16.msra.mxu1 %v3261_v20 }
 0x431   :  { %2653 = vmatprep.subr.bf16.mxu1 %v3265_v22 }
 0x434   :  { %2655 = vmatpush1.bf16.msra.mxu1 %v3274_v28 }
 0x435   :  { %2657 = vmatprep.subr.bf16.mxu1 %v3278_v29 }
 0x438   :  { %2659 = vmatpush1.bf16.msra.mxu1 %v3284_v32 }
 0x439   :  { %2677 = vmatprep.subr.bf16.mxu1 %v3250_v8 }
 0x4fe   :  { %v551_v21 = vpop.f32.mrb[2].mxu1 }
 0x4ff   :  { %v558_v23 = vrot.slane %v551_v21, 4  ;;  %v553_v24 = vpop.f32.mrb[3].mxu1 }
 0x500   :  { %v559_v25 = vrot.slane %v553_v24, 4 }
 0x501   :  { %v562_v27 = vadd.f32 %v558_v23, %v3341_v3 }
 0x502   :  { %v563_v30 = vadd.f32 %v559_v25, %v3349_v5 }
 0x503   :  { %v2502_v31 = vmul.f32 -1.442695, %v562_v27 }
 0x504   :  { %v565_v33 = vmul.f32 %v563_v30, %v3356_v10 }
 0x505   :  { %2900 = vpow2.f32 %v2502_v31 }
 0x506   :  { %v2503_v35 = vmul.f32 -1.442695, %v565_v33 }
 0x508   :  { %2902 = vpow2.f32 %v2503_v35 }
 0x50f   :  { %v2901_v37 = vpop.eup %2900 }
 0x510   :  { %v572_v40 = vadd.f32 1.0, %v2901_v37 }
 0x512   :  { %v2903_v41 = vpop.eup %2902  ;;  %2904 = vrcp.f32 %v572_v40 }
 0x513   :  { %v573_v39 = vadd.f32 1.0, %v2903_v41 }
 0x515   :  { %2906 = vrcp.f32 %v573_v39 }
 0x51c   :  { %v2905_v44 = vpop.eup %2904 }
 0x51d   :  { %v585_v45 = vmul.f32 %v2905_v44, %v583_v43 }
 0x51f   :  { %v2907_v46 = vpop.eup %2906 }
 0x520   :  { %v579_v3 = vmul.f32 %v2907_v46, %v3356_v10 }
 0x522   :  { %v581_v5 = vsub.f32 %v579_v3, %v3363_v26 }
 0x524   :  { %v586_v47 = vmul.f32 %v2905_v44, %v581_v5 }
 0x526   :  { %588 = vrot.lane.b32.xlu0 %v586_v47, %s3141_s3 }
 0x598   :  { %v589_v48 = vpop.permute.xlu0 %588 }
 0x599   :  { %v591_v49 = vadd.f32 %v589_v48, %v585_v45 }
 0x59b   :  { %2908 = vtanh.f32 %v591_v49 }
 0x5a5   :  { %v2909_v51 = vpop.eup %2908 }
 0x5a6   :  { %v3409_v52 = vmul.f32 %v2909_v51, %v581_v5 }
 0x5a8   :  { %v604_v53 = vrot.slane %v3409_v52, 4 }
 0x5aa   :  { %605 = vrot.lane.b32.xlu1 %v604_v53, %s3141_s3 }
 0x61c   :  { %v606_v55 = vpop.permute.xlu1 %605 }
 0x61d   :  { %2504 = vmatmul.mubr.msk.f32.vlgmr.msra.gmra.mrb[6].mxu0 %vm239_vm5, %v606_v55 }
 0x61e   :  { %2663 = vmatpush1.bf16.msra.mxu0 %v3252_v12  ;;  %925 = vmatprep.mubr.f32.mxu0 %v3139_v0 }
 0x61f   :  { %2665 = vmatprep.subr.bf16.mxu0 %v3258_v17 }
 0x622   :  { %2667 = vmatpush1.bf16.msra.mxu0 %v3261_v20 }
 0x623   :  { %2669 = vmatprep.subr.bf16.mxu0 %v3265_v22 }
 0x626   :  { %2671 = vmatpush1.bf16.msra.mxu0 %v3274_v28 }
 0x627   :  { %2673 = vmatprep.subr.bf16.mxu0 %v3278_v29 }
 0x62a   :  { %2675 = vmatpush1.bf16.msra.mxu0 %v3284_v32 }
 0x62b   :  { %2693 = vmatprep.subr.bf16.mxu0 %v3250_v8  ;;  %v707_v8 = vrot.slane %v591_v49, 6 }
 0x6f0   :  { %v675_v56 = vpop.f32.mrb[6].mxu0 }
 0x6f1   :  { %v682_v57 = vrot.slane %v675_v56, 2  ;;  %v677_v58 = vpop.f32.mrb[7].mxu0 }
 0x6f2   :  { %v683_v59 = vrot.slane %v677_v58, 2 }
 0x6f3   :  { %v686_v62 = vadd.f32 %v682_v57, %v3345_v4 }
 0x6f4   :  { %v687_v63 = vadd.f32 %v683_v59, %v3353_v6 }
 0x6f5   :  { %v2505_v7 = vmul.f32 -1.442695, %v686_v62 }
 0x6f6   :  { %v689_v9 = vmul.f32 %v687_v63, %v3356_v10 }
 0x6f7   :  { %2910 = vpow2.f32 %v2505_v7 }
 0x6f8   :  { %v2506_v11 = vmul.f32 -1.442695, %v689_v9 }
 0x6fa   :  { %2912 = vpow2.f32 %v2506_v11 }
 0x701   :  { %v2911_v13 = vpop.eup %2910 }
 0x702   :  { %v696_v14 = vadd.f32 1.0, %v2911_v13 }
 0x704   :  { %v2913_v15 = vpop.eup %2912  ;;  %2914 = vrcp.f32 %v696_v14 }
 0x705   :  { %v697_v18 = vadd.f32 1.0, %v2913_v15 }
 0x707   :  { %2916 = vrcp.f32 %v697_v18 }
 0x70e   :  { %v2915_v19 = vpop.eup %2914 }
 0x70f   :  { %v709_v21 = vmul.f32 %v2915_v19, %v707_v8 }
 0x711   :  { %v2917_v23 = vpop.eup %2916 }
 0x712   :  { %v703_v4 = vmul.f32 %v2917_v23, %v3356_v10 }
 0x714   :  { %v705_v6 = vsub.f32 %v703_v4, %v3363_v26 }
 0x716   :  { %v710_v24 = vmul.f32 %v2915_v19, %v705_v6 }
 0x718   :  { %712 = vrot.lane.b32.xlu0 %v710_v24, %s3141_s3 }
 0x78a   :  { %v713_v25 = vpop.permute.xlu0 %712 }
 0x78b   :  { %v715_v27 = vadd.f32 %v713_v25, %v709_v21 }
 0x78d   :  { %2918 = vtanh.f32 %v715_v27  ;;  %v833_v48 = vrot.slane %v715_v27, 6 }
 0x797   :  { %v2919_v30 = vpop.eup %2918 }
 0x798   :  { %v3429_v31 = vmul.f32 %v2919_v30, %v705_v6 }
 0x79a   :  { %v736_v33 = vrot.slane %v3429_v31, 6 }
 0x79c   :  { %737 = vrot.lane.b32.xlu1 %v736_v33, %s3141_s3 }
 0x80e   :  { %v738_v35 = vpop.permute.xlu1 %737 }
 0x80f   :  { %2507 = vmatmul.mubr.msk.f32.vlgmr.msra.gmra.mrb[4].mxu1 %vm239_vm5, %v738_v35 }
 0x810   :  { %2679 = vmatpush1.bf16.msra.mxu1 %v3252_v12  ;;  %1048 = vmatprep.mubr.f32.mxu1 %v3139_v0 }
 0x811   :  { %2681 = vmatprep.subr.bf16.mxu1 %v3258_v17 }
 0x814   :  { %2683 = vmatpush1.bf16.msra.mxu1 %v3261_v20 }
 0x815   :  { %2685 = vmatprep.subr.bf16.mxu1 %v3265_v22 }
 0x818   :  { %2687 = vmatpush1.bf16.msra.mxu1 %v3274_v28 }
 0x819   :  { %2689 = vmatprep.subr.bf16.mxu1 %v3278_v29 }
 0x81c   :  { %2691 = vmatpush1.bf16.msra.mxu1 %v3284_v32 }
 0x8e2   :  { %v807_v37 = vpop.f32.mrb[4].mxu1 }
 0x8e3   :  { %v812_v40 = vadd.f32 %v807_v37, %v3325_v60  ;;  %v809_v41 = vpop.f32.mrb[5].mxu1 }
 0x8e4   :  { %v813_v39 = vadd.f32 %v809_v41, %v3333_v1 }
 0x8e5   :  { %v2508_v43 = vmul.f32 -1.442695, %v812_v40 }
 0x8e6   :  { %v815_v44 = vmul.f32 %v813_v39, %v3356_v10 }
 0x8e7   :  { %2920 = vpow2.f32 %v2508_v43 }
 0x8e8   :  { %v2509_v45 = vmul.f32 -1.442695, %v815_v44 }
 0x8ea   :  { %2922 = vpow2.f32 %v2509_v45 }
 0x8f1   :  { %v2921_v46 = vpop.eup %2920 }
 0x8f2   :  { %v822_v3 = vadd.f32 1.0, %v2921_v46 }
 0x8f4   :  { %v2923_v5 = vpop.eup %2922  ;;  %2924 = vrcp.f32 %v822_v3 }
 0x8f5   :  { %v823_v47 = vadd.f32 1.0, %v2923_v5 }
 0x8f7   :  { %2926 = vrcp.f32 %v823_v47 }
 0x8fe   :  { %v2925_v49 = vpop.eup %2924 }
 0x8ff   :  { %v835_v51 = vmul.f32 %v2925_v49, %v833_v48 }
 0x901   :  { %v2927_v53 = vpop.eup %2926 }
 0x902   :  { %v829_v55 = vmul.f32 %v2927_v53, %v3356_v10 }
 0x904   :  { %v831_v56 = vsub.f32 %v829_v55, %v3363_v26 }
 0x906   :  { %v836_v57 = vmul.f32 %v2925_v49, %v831_v56 }
 0x908   :  { %838 = vrot.lane.b32.xlu0 %v836_v57, %s3141_s3 }
 0x97a   :  { %v839_v58 = vpop.permute.xlu0 %838 }
 0x97b   :  { %v841_v59 = vadd.f32 %v839_v58, %v835_v51 }
 0x97d   :  { %2928 = vtanh.f32 %v841_v59 }
 0x987   :  { %v2929_v62 = vpop.eup %2928 }
 0x988   :  { %v3448_v63 = vmul.f32 %v2929_v62, %v831_v56 }
 0x98a   :  { %845 = vrot.lane.b32.xlu1 %v3448_v63, %s3141_s3 }
 0x9fc   :  { %v846_v7 = vpop.permute.xlu1 %845 }
 0x9fd   :  { %848 = vst.msk [vmem:[#allocation2 + $0x8] sm:$0x3] %vm347_vm4, %v846_v7  ;;  %2510 = vmatmul.mubr.msk.f32.vlgmr.msra.gmra.mrb[8].mxu0 %vm239_vm5, %v846_v7 }
 0x9fe   :  { %2695 = vmatpush1.bf16.msra.mxu0 %v3252_v12  ;;  %1171 = vmatprep.mubr.f32.mxu0 %v3139_v0 }
 0x9ff   :  { %2697 = vmatprep.subr.bf16.mxu0 %v3258_v17 }
 0xa02   :  { %2699 = vmatpush1.bf16.msra.mxu0 %v3261_v20 }
 0xa03   :  { %2701 = vmatprep.subr.bf16.mxu0 %v3265_v22 }
 0xa06   :  { %2703 = vmatpush1.bf16.msra.mxu0 %v3274_v28 }
 0xa07   :  { %2705 = vmatprep.subr.bf16.mxu0 %v3278_v29 }
 0xa0a   :  { %2707 = vmatpush1.bf16.msra.mxu0 %v3284_v32  ;;  %v959_v32 = vrot.slane %v841_v59, 6 }
 0xad0   :  { %v927_v9 = vpop.f32.mrb[8].mxu0 }
 0xad1   :  { %v934_v11 = vrot.slane %v927_v9, 6  ;;  %v929_v13 = vpop.f32.mrb[9].mxu0 }
 0xad2   :  { %v935_v14 = vrot.slane %v929_v13, 6 }
 0xad3   :  { %v938_v12 = vadd.f32 %v934_v11, %v3329_v61 }
 0xad4   :  { %v939_v15 = vadd.f32 %v935_v14, %v3337_v2 }
 0xad5   :  { %v2511_v18 = vmul.f32 -1.442695, %v938_v12 }
 0xad6   :  { %v941_v17 = vmul.f32 %v939_v15, %v3356_v10 }
 0xad7   :  { %2930 = vpow2.f32 %v2511_v18 }
 0xad8   :  { %v2512_v20 = vmul.f32 -1.442695, %v941_v17 }
 0xada   :  { %2932 = vpow2.f32 %v2512_v20 }
 0xae1   :  { %v2931_v22 = vpop.eup %2930 }
 0xae2   :  { %v948_v28 = vadd.f32 1.0, %v2931_v22 }
 0xae4   :  { %v2933_v8 = vpop.eup %2932  ;;  %2934 = vrcp.f32 %v948_v28 }
 0xae5   :  { %v949_v29 = vadd.f32 1.0, %v2933_v8 }
 0xae7   :  { %2936 = vrcp.f32 %v949_v29 }
 0xaee   :  { %v2935_v19 = vpop.eup %2934 }
 0xaef   :  { %v961_v21 = vmul.f32 %v2935_v19, %v959_v32 }
 0xaf1   :  { %v2937_v23 = vpop.eup %2936 }
 0xaf2   :  { %v955_v4 = vmul.f32 %v2937_v23, %v3356_v10 }
 0xaf4   :  { %v957_v6 = vsub.f32 %v955_v4, %v3363_v26 }
 0xaf6   :  { %v962_v24 = vmul.f32 %v2935_v19, %v957_v6 }
 0xaf8   :  { %964 = vrot.lane.b32.xlu0 %v962_v24, %s3141_s3 }
 0xb6a   :  { %v965_v25 = vpop.permute.xlu0 %964 }
 0xb6b   :  { %v967_v27 = vadd.f32 %v965_v25, %v961_v21 }
 0xb6d   :  { %2938 = vtanh.f32 %v967_v27  ;;  %v1082_v53 = vrot.slane %v967_v27, 6 }
 0xb77   :  { %v2939_v30 = vpop.eup %2938 }
 0xb78   :  { %v3468_v33 = vmul.f32 %v2939_v30, %v957_v6 }
 0xb7a   :  { %v979_v35 = vrot.slane %v3468_v33, 2 }
 0xb7c   :  { %980 = vrot.lane.b32.xlu1 %v979_v35, %s3141_s3 }
 0xbee   :  { %v981_v37 = vpop.permute.xlu1 %980 }
 0xbef   :  { %2513 = vmatmul.mubr.msk.f32.vlgmr.msra.gmra.mrb[6].mxu1 %vm239_vm5, %v981_v37 }
 0xbf0   :  { %1333 = vmatprep.mubr.f32.mxu1 %v3139_v0 }
 0xcc2   :  { %v1050_v40 = vpop.f32.mrb[6].mxu1 }
 0xcc3   :  { %v1057_v41 = vrot.slane %v1050_v40, 4  ;;  %v1052_v39 = vpop.f32.mrb[7].mxu1 }
 0xcc4   :  { %v1058_v43 = vrot.slane %v1052_v39, 4  ;;  %v1257_v39 = vld [vmem:[%s3821_s4 + $0x58] sm:$0xff] }
 0xcc5   :  { %v1061_v44 = vadd.f32 %v1057_v41, %v3325_v60  ;;  %v1255_v41 = vld [vmem:[%s3821_s4 + $0x48] sm:$0xff] }
 0xcc6   :  { %v1062_v45 = vadd.f32 %v1058_v43, %v3333_v1  ;;  %v2708_v43 = vpack.c.bf16 %v1257_v39, %v1255_v41 }
 0xcc7   :  { %v2514_v46 = vmul.f32 -1.442695, %v1061_v44 }
 0xcc8   :  { %v1064_v3 = vmul.f32 %v1062_v45, %v3356_v10  ;;  %2709 = vmatprep.subr.bf16.mxu1 %v2708_v43 }
 0xcc9   :  { %2940 = vpow2.f32 %v2514_v46  ;;  %v1254_v46 = vld [vmem:[%s3821_s4 + $0x40] sm:$0xff] }
 0xcca   :  { %v2515_v5 = vmul.f32 -1.442695, %v1064_v3  ;;  %v1259_v3 = vld [vmem:[%s3821_s4 + $0x68] sm:$0xff] }
 0xccc   :  { %2942 = vpow2.f32 %v2515_v5  ;;  %v1261_v5 = vld [vmem:[%s3821_s4 + $0x78] sm:$0xff] }
 0xcd3   :  { %v2941_v47 = vpop.eup %2940 }
 0xcd4   :  { %v1071_v48 = vadd.f32 1.0, %v2941_v47 }
 0xcd6   :  { %v2943_v49 = vpop.eup %2942  ;;  %2944 = vrcp.f32 %v1071_v48  ;;  %v2712_v48 = vpack.c.bf16 %v1261_v5, %v1259_v3  ;;  %v1245_v5 = vld [vmem:[%s3823_s6] sm:$0x3] }
 0xcd7   :  { %v1072_v51 = vadd.f32 1.0, %v2943_v49  ;;  %v1258_v49 = vld [vmem:[%s3821_s4 + $0x60] sm:$0xff] }
 0xcd9   :  { %2946 = vrcp.f32 %v1072_v51  ;;  %v1260_v51 = vld [vmem:[%s3821_s4 + $0x70] sm:$0xff] }
 0xce0   :  { %v2945_v55 = vpop.eup %2944 }
 0xce1   :  { %v1084_v56 = vmul.f32 %v2945_v55, %v1082_v53  ;;  %v2714_v53 = vpack.c.bf16 %v1260_v51, %v1258_v49 }
 0xce3   :  { %v2947_v57 = vpop.eup %2946 }
 0xce4   :  { %v1078_v60 = vmul.f32 %v2947_v57, %v3356_v10 }
 0xce6   :  { %v1080_v1 = vsub.f32 %v1078_v60, %v3363_v26 }
 0xce8   :  { %v1085_v58 = vmul.f32 %v2945_v55, %v1080_v1  ;;  %v1247_v55 = vld [vmem:[%s3821_s4 + $0x8] sm:$0xff] }
 0xcea   :  { %1087 = vrot.lane.b32.xlu0 %v1085_v58, %s3141_s3  ;;  %v1232_v58 = vld [vmem:[#allocation9 + $0x18] sm:$0xff] }
 0xd5c   :  { %v1088_v59 = vpop.permute.xlu0 %1087 }
 0xd5d   :  { %v1090_v62 = vadd.f32 %v1088_v59, %v1084_v56  ;;  %v1249_v56 = vld [vmem:[%s3821_s4 + $0x18] sm:$0xff] }
 0xd5e   :  { %v2716_v60 = vpack.c.bf16 %v1249_v56, %v1247_v55 }
 0xd5f   :  { %2948 = vtanh.f32 %v1090_v62  ;;  %v1205_v27 = vrot.slane %v1090_v62, 6  ;;  %v1229_v62 = vld [vmem:[#allocation9] sm:$0xff] }
 0xd69   :  { %v2949_v7 = vpop.eup %2948 }
 0xd6a   :  { %v1092_v9 = vmul.f32 %v2949_v7, %v1080_v1  ;;  %v1230_v1 = vld [vmem:[#allocation9 + $0x8] sm:$0xff]  ;;  %v1231_v7 = vld [vmem:[#allocation9 + $0x10] sm:$0xff] }
 0xd6b   :  { %v3546_v59 = vpack.c.bf16 %v1232_v58, %v1230_v1 }
 0xd6c   :  { %v1102_v11 = vrot.slane %v1092_v9, 4 }
 0xd6d   :  { %2725 = vmatprep.subr.bf16.mxu0 %v3546_v59 }
 0xd6e   :  { %1103 = vrot.lane.b32.xlu1 %v1102_v11, %s3141_s3 }
 0xd72   :  { %849 = vrot.lane.b32.xlu1 %v3448_v63, %s3142_s28 }
 0xd76   :  { %1098 = vrot.lane.b32.xlu1 %v1092_v9, %s3142_s28 }
 0xd7a   :  { %349 = vrot.lane.b32.xlu1 %v3368_v42, %s3142_s28 }
 0xd7e   :  { %600 = vrot.lane.b32.xlu1 %v3409_v52, %s3142_s28 }
 0xd82   :  { %471 = vrot.lane.b32.xlu1 %v3389_v16, %s3141_s3 }
 0xd86   :  { %719 = vrot.lane.b32.xlu1 %v3429_v31, %s3141_s3 }
 0xd8a   :  { %1094 = vrot.lane.b32.xlu1 %v1092_v9, %s3141_s3  ;;  %v3549_v9 = vpack.c.bf16 %v1231_v7, %v1229_v62 }
 0xde0   :  { %v1104_v13 = vpop.permute.xlu1 %1103 }
 0xde1   :  { %2516 = vmatmul.mubr.msk.f32.vlgmr.msra.gmra.mrb[10].mxu0 %vm239_vm5, %v1104_v13  ;;  %v1234_v13 = vld [vmem:[#allocation9 + $0x28] sm:$0xff] }
 0xde2   :  { %1516 = vmatprep.mubr.f32.mxu0 %v3139_v0  ;;  %2727 = vmatpush1.bf16.msra.mxu0 %v3549_v9 }
 0xde4   :  { %v850_v63 = vpop.permute.xlu1 %849 }
 0xde5   :  { %852 = vst.msk [vmem:[#allocation3 + $0x6] sm:$0x3] %vm347_vm4, %v850_v63 }
 0xde8   :  { %v1099_v42 = vpop.permute.xlu1 %1098 }
 0xde9   :  { %1101 = vst.msk [vmem:[#allocation3 - $0x2] sm:$0x30] %vm598_vm6, %v1099_v42  ;;  %v1236_v42 = vld [vmem:[#allocation9 + $0x38] sm:$0xff] }
 0xdec   :  { %v350_v14 = vpop.permute.xlu1 %349 }
 0xded   :  { %352 = vst.msk [vmem:[#allocation3 + $0xe] sm:$0x3] %vm347_vm4, %v350_v14 }
 0xdf0   :  { %v601_v12 = vpop.permute.xlu1 %600 }
 0xdf1   :  { %603 = vst.msk [vmem:[#allocation3 + $0x6] sm:$0x30] %vm598_vm6, %v601_v12  ;;  %v3553_v12 = vpack.c.bf16 %v1236_v42, %v1234_v13 }
 0xdf3   :  { %2729 = vmatprep.subr.bf16.mxu0 %v3553_v12 }
 0xdf4   :  { %v472_v15 = vpop.permute.xlu1 %471 }
 0xdf5   :  { %475 = vst.msk [vmem:[#allocation2] sm:$0xc] %vm474_vm7, %v472_v15  ;;  %v1233_v15 = vld [vmem:[#allocation9 + $0x20] sm:$0xff] }
 0xdf8   :  { %v720_v18 = vpop.permute.xlu1 %719 }
 0xdf9   :  { %723 = vst.msk [vmem:[#allocation2] sm:$0xc0] %vm722_vm8, %v720_v18  ;;  %v1235_v18 = vld [vmem:[#allocation9 + $0x30] sm:$0xff] }
 0xdfc   :  { %v1095_v17 = vpop.permute.xlu1 %1094 }
 0xdfd   :  { %1097 = vst.msk [vmem:[#allocation2 + $0x8] sm:$0x30] %vm598_vm6, %v1095_v17  ;;  %v3555_v17 = vpack.c.bf16 %v1235_v18, %v1233_v15 }
 0xdff   :  { %2731 = vmatpush1.bf16.msra.mxu0 %v3555_v17 }
 0xeb4   :  { %v1173_v20 = vpop.f32.mrb[10].mxu0 }
 0xeb5   :  { %v1180_v22 = vrot.slane %v1173_v20, 2  ;;  %v1175_v28 = vpop.f32.mrb[11].mxu0  ;;  %v1238_v20 = vld [vmem:[#allocation9 + $0x48] sm:$0xff] }
 0xeb6   :  { %v1181_v8 = vrot.slane %v1175_v28, 2 }
 0xeb7   :  { %v1184_v29 = vadd.f32 %v1180_v22, %v3329_v61  ;;  %v1240_v22 = vld [vmem:[#allocation9 + $0x58] sm:$0xff] }
 0xeb8   :  { %v1185_v32 = vadd.f32 %v1181_v8, %v3337_v2  ;;  %v3560_v28 = vpack.c.bf16 %v1240_v22, %v1238_v20  ;;  %v1237_v8 = vld [vmem:[#allocation9 + $0x40] sm:$0xff] }
 0xeb9   :  { %v2517_v19 = vmul.f32 -1.442695, %v1184_v29  ;;  %v1239_v29 = vld [vmem:[#allocation9 + $0x50] sm:$0xff] }
 0xeba   :  { %v1187_v21 = vmul.f32 %v1185_v32, %v3356_v10  ;;  %v3562_v32 = vpack.c.bf16 %v1239_v29, %v1237_v8  ;;  %2733 = vmatprep.subr.bf16.mxu0 %v3560_v28 }
 0xebb   :  { %2950 = vpow2.f32 %v2517_v19  ;;  %v1242_v19 = vld [vmem:[#allocation9 + $0x68] sm:$0xff] }
 0xebc   :  { %v2518_v23 = vmul.f32 -1.442695, %v1187_v21  ;;  %v1244_v21 = vld [vmem:[#allocation9 + $0x78] sm:$0xff]  ;;  %2735 = vmatpush1.bf16.msra.mxu0 %v3562_v32 }
 0xebe   :  { %2952 = vpow2.f32 %v2518_v23  ;;  %v3568_v23 = vpack.c.bf16 %v1244_v21, %v1242_v19 }
 0xec0   :  { %2737 = vmatprep.subr.bf16.mxu0 %v3568_v23 }
 0xec5   :  { %v2951_v4 = vpop.eup %2950 }
 0xec6   :  { %v1194_v6 = vadd.f32 1.0, %v2951_v4  ;;  %v1241_v4 = vld [vmem:[#allocation9 + $0x60] sm:$0xff] }
 0xec8   :  { %v2953_v24 = vpop.eup %2952  ;;  %2954 = vrcp.f32 %v1194_v6  ;;  %v1243_v6 = vld [vmem:[#allocation9 + $0x70] sm:$0xff] }
 0xec9   :  { %v1195_v25 = vadd.f32 1.0, %v2953_v24  ;;  %v3570_v24 = vpack.c.bf16 %v1243_v6, %v1241_v4 }
 0xecb   :  { %2956 = vrcp.f32 %v1195_v25  ;;  %2739 = vmatpush1.bf16.msra.mxu0 %v3570_v24  ;;  %v1248_v25 = vld [vmem:[%s3821_s4 + $0x10] sm:$0xff] }
 0xecc   :  { %2757 = vmatprep.subr.bf16.mxu0 %v3546_v59 }
 0xece   :  { %1517 = vmatmul.mubr.f32.vlgmr.msra.gmra.mrb[12].mxu0 %v3139_v0 }
 0xecf   :  { %2759 = vmatpush1.bf16.msra.mxu0 %v3549_v9  ;;  %1745 = vmatprep.mubr.f32.mxu0 %v3139_v0 }
 0xed0   :  { %2761 = vmatprep.subr.bf16.mxu0 %v3553_v12 }
 0xed2   :  { %v2955_v30 = vpop.eup %2954 }
 0xed3   :  { %v1207_v35 = vmul.f32 %v2955_v30, %v1205_v27  ;;  %2763 = vmatpush1.bf16.msra.mxu0 %v3555_v17 }
 0xed4   :  { %2765 = vmatprep.subr.bf16.mxu0 %v3560_v28 }
 0xed5   :  { %v2957_v37 = vpop.eup %2956 }
 0xed6   :  { %v1201_v61 = vmul.f32 %v2957_v37, %v3356_v10 }
 0xed7   :  { %2767 = vmatpush1.bf16.msra.mxu0 %v3562_v32 }
 0xed8   :  { %v1203_v2 = vsub.f32 %v1201_v61, %v3363_v26  ;;  %2769 = vmatprep.subr.bf16.mxu0 %v3568_v23 }
 0xeda   :  { %v1208_v40 = vmul.f32 %v2955_v30, %v1203_v2  ;;  %v1251_v30 = vld [vmem:[%s3821_s4 + $0x28] sm:$0xff] }
 0xedb   :  { %2771 = vmatpush1.bf16.msra.mxu0 %v3570_v24 }
 0xedc   :  { %1210 = vrot.lane.b32.xlu0 %v1208_v40, %s3141_s3  ;;  %2789 = vmatprep.subr.bf16.mxu0 %v3546_v59  ;;  %v1252_v40 = vld [vmem:[%s3821_s4 + $0x30] sm:$0xff] }
 0xee0   :  { %975 = vrot.lane.b32.xlu0 %v3468_v33, %s3142_s28 }
 0xee4   :  { %476 = vrot.lane.b32.xlu0 %v3389_v16, %s3142_s28  ;;  %v1256_v16 = vld [vmem:[%s3821_s4 + $0x50] sm:$0xff] }
 0xee8   :  { %724 = vrot.lane.b32.xlu0 %v3429_v31, %s3142_s28  ;;  %v2710_v31 = vpack.c.bf16 %v1256_v16, %v1254_v46 }
 0xeea   :  { %2711 = vmatpush1.bf16.msra.mxu1 %v2710_v31 }
 0xeeb   :  { %2713 = vmatprep.subr.bf16.mxu1 %v2712_v48  ;;  %v1437_v48 = vrot.slane %v1245_v5, %v143_v38 }
 0xeee   :  { %2715 = vmatpush1.bf16.msra.mxu1 %v2714_v53 }
 0xeef   :  { %2717 = vmatprep.subr.bf16.mxu1 %v2716_v60 }
 0xf4e   :  { %v1211_v44 = vpop.permute.xlu0 %1210 }
 0xf4f   :  { %v1213_v45 = vadd.f32 %v1211_v44, %v1207_v35  ;;  %v1253_v35 = vld [vmem:[%s3821_s4 + $0x38] sm:$0xff] }
 0xf50   :  { %v2720_v61 = vpack.c.bf16 %v1253_v35, %v1251_v30 }
 0xf51   :  { %2958 = vtanh.f32 %v1213_v45 }
 0xf52   :  { %v976_v47 = vpop.permute.xlu0 %975 }
 0xf53   :  { %978 = vst.msk [vmem:[#allocation3 + $0x2] sm:$0xc] %vm474_vm7, %v976_v47  ;;  %v1433_v47 = vrot.slane %v1245_v5, %v139_v36 }
 0xf56   :  { %v477_v57 = vpop.permute.xlu0 %476 }
 0xf57   :  { %479 = vst.msk [vmem:[#allocation3 + $0xa] sm:$0xc] %vm474_vm7, %v477_v57 }
 0xf5a   :  { %v725_v11 = vpop.permute.xlu0 %724 }
 0xf5b   :  { %v2959_v63 = vpop.eup %2958  ;;  %727 = vst.msk [vmem:[#allocation3 + $0x2] sm:$0xc0] %vm722_vm8, %v725_v11 }
 0xf5c   :  { %v1215_v14 = vmul.f32 %v2959_v63, %v1203_v2  ;;  %v1250_v2 = vld [vmem:[%s3821_s4 + $0x20] sm:$0xff] }
 0xf5d   :  { %v2722_v43 = vpack.c.bf16 %v1252_v40, %v1250_v2 }
 0xf5e   :  { %1221 = vrot.lane.b32.xlu0 %v1215_v14, %s3142_s28 }
 0xf62   :  { %595 = vrot.lane.b32.xlu0 %v3409_v52, %s3141_s3  ;;  %v1228_v45 = vld [vmem:[#allocation3 + $0x8] sm:$0xff] }
 0xf66   :  { %971 = vrot.lane.b32.xlu0 %v3468_v33, %s3141_s3  ;;  %v1246_v33 = vld [vmem:[%s3821_s4] sm:$0xff] }
 0xf67   :  { %v2718_v37 = vpack.c.bf16 %v1248_v25, %v1246_v33 }
 0xf6a   :  { %1217 = vrot.lane.b32.xlu0 %v1215_v14, %s3141_s3 }
 0xfa1   :  { %v1518_v31 = vpop.f32.mrb[12].mxu0 }
 0xfa2   :  { %v1520_v3 = vpop.f32.mrb[13].mxu0 }
 0xfd0   :  { %v1222_v52 = vpop.permute.xlu0 %1221 }
 0xfd1   :  { %1224 = vst.msk [vmem:[#allocation3 - $0x6] sm:$0xc0] %vm722_vm8, %v1222_v52 }
 0xfd4   :  { %v596_v27 = vpop.permute.xlu0 %595 }
 0xfd5   :  { %599 = vst.msk [vmem:[#allocation2] sm:$0x30] %vm598_vm6, %v596_v27 }
 0xfd8   :  { %v972_v41 = vpop.permute.xlu0 %971  ;;  %v1227_v39 = vld [vmem:[#allocation3] sm:$0xff] }
 0xfd9   :  { %974 = vst.msk [vmem:[#allocation2 + $0x8] sm:$0xc] %vm474_vm7, %v972_v41  ;;  %2519 = vmatmul.mubr.msk.f32.vlgmr.msra.gmra.mrb[8].mxu1 %vm1262_vm9, %v1227_v39 }
 0xfda   :  { %2719 = vmatpush1.bf16.msra.mxu1 %v2718_v37  ;;  %1339 = vmatprep.mubr.f32.mxu1 %v3139_v0 }
 0xfdb   :  { %2721 = vmatprep.subr.bf16.mxu1 %v2720_v61 }
 0xfdc   :  { %v1218_v44 = vpop.permute.xlu0 %1217  ;;  %v1225_v46 = vld [vmem:[#allocation2] sm:$0xff] }
 0xfdd   :  { %1220 = vst.msk [vmem:[#allocation2 + $0x8] sm:$0xc0] %vm722_vm8, %v1218_v44  ;;  %2520 = vmatmul.mubr.msk.f32.gmra.mrb[10].mxu1 %vm1262_vm9, %v1228_v45 }
 0xfde   :  { %2723 = vmatpush1.bf16.msra.mxu1 %v2722_v43  ;;  %1416 = vmatprep.mubr.f32.mxu1 %v3139_v0 }
 0xfdf   :  { %2741 = vmatprep.subr.bf16.mxu1 %v3546_v59 }
 0xfe1   :  { %2521 = vmatmul.mubr.msk.f32.vlgmr.msra.gmra.mrb[8].mxu1 %vm1262_vm9, %v1225_v46 }
 0xfe2   :  { %1422 = vmatprep.mubr.f32.mxu1 %v3139_v0  ;;  %2743 = vmatpush1.bf16.msra.mxu1 %v3549_v9 }
 0xfe3   :  { %2745 = vmatprep.subr.bf16.mxu1 %v3553_v12 }
 0xfe4   :  { %v1226_v16 = vld [vmem:[#allocation2 + $0x8] sm:$0xff] }
 0xfe5   :  { %2522 = vmatmul.mubr.msk.f32.gmra.mrb[10].mxu1 %vm1262_vm9, %v1226_v16 }
 0xfe6   :  { %2747 = vmatpush1.bf16.msra.mxu1 %v3555_v17  ;;  %1628 = vmatprep.mubr.f32.mxu1 %v3139_v0 }
 0xfe7   :  { %2749 = vmatprep.subr.bf16.mxu1 %v3560_v28 }
 0xfea   :  { %2751 = vmatpush1.bf16.msra.mxu1 %v3562_v32 }
 0xfeb   :  { %2753 = vmatprep.subr.bf16.mxu1 %v3568_v23 }
 0xfee   :  { %2755 = vmatpush1.bf16.msra.mxu1 %v3570_v24 }
 0xfef   :  { %2773 = vmatprep.subr.bf16.mxu1 %v3546_v59 }
0x10b4   :  { %v1418_v49 = vpop.f32.mrb[8].mxu1 }
0x10b5   :  { %v1440_v51 = vadd.f32 %v1433_v47, %v1418_v49  ;;  %v1420_v53 = vpop.f32.mrb[9].mxu1 }
0x10b6   :  { %v1441_v55 = vadd.f32 %v1437_v48, %v1420_v53 }
0x10b7   :  { %v1913_v1 = vrot.slane %v1440_v51, 6  ;;  %v2027_v58 = vrot.slane %v1440_v51, 2 }
0x10b8   :  { %v1424_v56 = vpop.f32.mrb[10].mxu1  ;;  %v1914_v7 = vrot.slane %v1441_v55, 6  ;;  %v2028_v11 = vrot.slane %v1441_v55, 2 }
0x10b9   :  { %v1442_v57 = vadd.f32 %v1433_v47, %v1424_v56  ;;  %v1426_v60 = vpop.f32.mrb[11].mxu1 }
0x10ba   :  { %v1443_v62 = vadd.f32 %v1437_v48, %v1426_v60 }
0x10bb   :  { %v1446_v13 = vrot.slane %v1442_v57, 6  ;;  %v1553_v63 = vrot.slane %v1442_v57, 2  ;;  %v3636_v36 = vsel %vm3315_vm1, %v1442_v57, %v1913_v1  ;;  %v3640_v34 = vsel %vm3315_vm1, %v1442_v57, %v2027_v58 }
0x10bc   :  { %v1447_v38 = vrot.slane %v1443_v62, 6  ;;  %v1554_v42 = vrot.slane %v1443_v62, 2  ;;  %v3644_v14 = vsel %vm3319_vm2, %v1443_v62, %v1914_v7  ;;  %v3648_v15 = vsel %vm3319_vm2, %v1443_v62, %v2028_v11 }
0x10bd   :  { %v3652_v18 = vsel %vm3315_vm1, %v1440_v51, %v1446_v13  ;;  %v3656_v20 = vsel %vm3315_vm1, %v1440_v51, %v1553_v63 }
0x10be   :  { %v1523_v22 = vadd.f32 %v1518_v31, %v3652_v18  ;;  %v3661_v8 = vsel %vm3319_vm2, %v1441_v55, %v1447_v38  ;;  %v3665_v29 = vsel %vm3319_vm2, %v1441_v55, %v1554_v42 }
0x10bf   :  { %v1524_v19 = vadd.f32 %v1520_v3, %v3661_v8 }
0x10c0   :  { %v2523_v21 = vmul.f32 -1.442695, %v1523_v22 }
0x10c1   :  { %v1526_v4 = vmul.f32 %v1524_v19, %v3356_v10 }
0x10c2   :  { %2960 = vpow2.f32 %v2523_v21 }
0x10c3   :  { %v2524_v6 = vmul.f32 -1.442695, %v1526_v4 }
0x10c5   :  { %2962 = vpow2.f32 %v2524_v6 }
0x10cc   :  { %v2961_v50 = vpop.eup %2960 }
0x10cd   :  { %v1533_v25 = vadd.f32 1.0, %v2961_v50 }
0x10cf   :  { %v2963_v52 = vpop.eup %2962 }
0x10d0   :  { %v1534_v33 = vadd.f32 1.0, %v2963_v52 }
0x10d2   :  { %2964 = vrcp.f32 %v1534_v33 }
0x10d3   :  { %2966 = vrcp.f32 %v1533_v25 }
0x10dc   :  { %v2965_v27 = vpop.eup %2964 }
0x10dd   :  { %v1540_v30 = vmul.f32 %v2965_v27, %v3356_v10  ;;  %v2967_v35 = vpop.eup %2966 }
0x10de   :  { %v1543_v61 = vmul.f32 0.0, %v2967_v35 }
0x10df   :  { %v1542_v54 = vsub.f32 %v1540_v30, %v3363_v26 }
0x10e1   :  { %v1544_v37 = vmul.f32 %v2967_v35, %v1542_v54 }
0x10e3   :  { %1546 = vrot.lane.b32.xlu1 %v1544_v37, %s3141_s3 }
0x1155   :  { %v1547_v2 = vpop.permute.xlu1 %1546 }
0x1156   :  { %v1549_v40 = vadd.f32 %v1547_v2, %v1543_v61 }
0x1158   :  { %2968 = vtanh.f32 %v1549_v40  ;;  %v1662_v56 = vrot.slane %v1549_v40, 6 }
0x1162   :  { %v2969_v41 = vpop.eup %2968 }
0x1163   :  { %v3672_v39 = vmul.f32 %v2969_v41, %v1542_v54 }
0x1165   :  { %1560 = vrot.lane.b32.xlu0 %v3672_v39, %s3141_s3 }
0x11d7   :  { %v1561_v43 = vpop.permute.xlu0 %1560 }
0x11d8   :  { %2525 = vmatmul.mubr.msk.f32.vlgmr.msra.gmra.mrb[12].mxu1 %vm239_vm5, %v1561_v43 }
0x11d9   :  { %2775 = vmatpush1.bf16.msra.mxu1 %v3549_v9  ;;  %1862 = vmatprep.mubr.f32.mxu1 %v3139_v0 }
0x11da   :  { %2777 = vmatprep.subr.bf16.mxu1 %v3553_v12 }
0x11dd   :  { %2779 = vmatpush1.bf16.msra.mxu1 %v3555_v17 }
0x11de   :  { %2781 = vmatprep.subr.bf16.mxu1 %v3560_v28 }
0x11e1   :  { %2783 = vmatpush1.bf16.msra.mxu1 %v3562_v32 }
0x11e2   :  { %2785 = vmatprep.subr.bf16.mxu1 %v3568_v23 }
0x11e5   :  { %2787 = vmatpush1.bf16.msra.mxu1 %v3570_v24 }
0x11e6   :  { %2805 = vmatprep.subr.bf16.mxu1 %v3546_v59 }
0x12ab   :  { %v1630_v44 = vpop.f32.mrb[12].mxu1 }
0x12ac   :  { %v1637_v45 = vrot.slane %v1630_v44, 6  ;;  %v1632_v46 = vpop.f32.mrb[13].mxu1 }
0x12ad   :  { %v1638_v16 = vrot.slane %v1632_v46, 6 }
0x12ae   :  { %v1641_v31 = vadd.f32 %v1637_v45, %v3656_v20 }
0x12af   :  { %v1642_v3 = vadd.f32 %v1638_v16, %v3665_v29 }
0x12b0   :  { %v2526_v5 = vmul.f32 -1.442695, %v1641_v31 }
0x12b1   :  { %v1644_v47 = vmul.f32 %v1642_v3, %v3356_v10 }
0x12b2   :  { %2970 = vpow2.f32 %v2526_v5 }
0x12b3   :  { %v2527_v48 = vmul.f32 -1.442695, %v1644_v47 }
0x12b5   :  { %2972 = vpow2.f32 %v2527_v48 }
0x12bc   :  { %v2971_v49 = vpop.eup %2970 }
0x12bd   :  { %v1651_v51 = vadd.f32 1.0, %v2971_v49 }
0x12bf   :  { %v2973_v53 = vpop.eup %2972  ;;  %2974 = vrcp.f32 %v1651_v51 }
0x12c0   :  { %v1652_v55 = vadd.f32 1.0, %v2973_v53 }
0x12c2   :  { %2976 = vrcp.f32 %v1652_v55 }
0x12c9   :  { %v2975_v57 = vpop.eup %2974 }
0x12ca   :  { %v1664_v60 = vmul.f32 %v2975_v57, %v1662_v56 }
0x12cc   :  { %v2977_v1 = vpop.eup %2976 }
0x12cd   :  { %v1658_v58 = vmul.f32 %v2977_v1, %v3356_v10 }
0x12cf   :  { %v1660_v62 = vsub.f32 %v1658_v58, %v3363_v26 }
0x12d1   :  { %v1665_v7 = vmul.f32 %v2975_v57, %v1660_v62 }
0x12d3   :  { %1667 = vrot.lane.b32.xlu1 %v1665_v7, %s3141_s3 }
0x1345   :  { %v1668_v11 = vpop.permute.xlu1 %1667 }
0x1346   :  { %v1670_v13 = vadd.f32 %v1668_v11, %v1664_v60 }
0x1348   :  { %2978 = vtanh.f32 %v1670_v13  ;;  %v1779_v61 = vrot.slane %v1670_v13, 6 }
0x1352   :  { %v2979_v63 = vpop.eup %2978 }
0x1353   :  { %v1672_v38 = vmul.f32 %v2979_v63, %v1660_v62 }
0x1355   :  { %v1674_v42 = vrot.slane %v1672_v38, 2 }
0x1357   :  { %1677 = vrot.lane.b32.xlu0 %v1674_v42, %s3141_s3  ;;  %v1676_v31 = vadd.f32 %v1674_v42, %v3672_v39 }
0x13c9   :  { %v1678_v22 = vpop.permute.xlu0 %1677 }
0x13ca   :  { %2528 = vmatmul.mubr.msk.f32.vlgmr.msra.gmra.mrb[14].mxu0 %vm239_vm5, %v1678_v22 }
0x13cb   :  { %2791 = vmatpush1.bf16.msra.mxu0 %v3549_v9  ;;  %1987 = vmatprep.mubr.f32.mxu0 %v3139_v0 }
0x13cc   :  { %2793 = vmatprep.subr.bf16.mxu0 %v3553_v12 }
0x13cf   :  { %2795 = vmatpush1.bf16.msra.mxu0 %v3555_v17 }
0x13d0   :  { %2797 = vmatprep.subr.bf16.mxu0 %v3560_v28 }
0x13d3   :  { %2799 = vmatpush1.bf16.msra.mxu0 %v3562_v32 }
0x13d4   :  { %2801 = vmatprep.subr.bf16.mxu0 %v3568_v23 }
0x13d7   :  { %2803 = vmatpush1.bf16.msra.mxu0 %v3570_v24 }
0x13d8   :  { %2821 = vmatprep.subr.bf16.mxu0 %v3546_v59 }
0x149d   :  { %v1747_v19 = vpop.f32.mrb[14].mxu0 }
0x149e   :  { %v1754_v21 = vrot.slane %v1747_v19, 4  ;;  %v1749_v4 = vpop.f32.mrb[15].mxu0 }
0x149f   :  { %v1755_v6 = vrot.slane %v1749_v4, 4 }
0x14a0   :  { %v1758_v50 = vadd.f32 %v1754_v21, %v3652_v18 }
0x14a1   :  { %v1759_v52 = vadd.f32 %v1755_v6, %v3661_v8 }
0x14a2   :  { %v2529_v33 = vmul.f32 -1.442695, %v1758_v50 }
0x14a3   :  { %v1761_v25 = vmul.f32 %v1759_v52, %v3356_v10 }
0x14a4   :  { %2980 = vpow2.f32 %v2529_v33 }
0x14a5   :  { %v2530_v27 = vmul.f32 -1.442695, %v1761_v25 }
0x14a7   :  { %2982 = vpow2.f32 %v2530_v27 }
0x14ae   :  { %v2981_v30 = vpop.eup %2980 }
0x14af   :  { %v1768_v54 = vadd.f32 1.0, %v2981_v30 }
0x14b1   :  { %v2983_v35 = vpop.eup %2982  ;;  %2984 = vrcp.f32 %v1768_v54 }
0x14b2   :  { %v1769_v37 = vadd.f32 1.0, %v2983_v35 }
0x14b4   :  { %2986 = vrcp.f32 %v1769_v37 }
0x14bb   :  { %v2985_v2 = vpop.eup %2984 }
0x14bc   :  { %v1781_v40 = vmul.f32 %v2985_v2, %v1779_v61 }
0x14be   :  { %v2987_v41 = vpop.eup %2986 }
0x14bf   :  { %v1775_v18 = vmul.f32 %v2987_v41, %v3356_v10 }
0x14c1   :  { %v1777_v8 = vsub.f32 %v1775_v18, %v3363_v26 }
0x14c3   :  { %v1782_v43 = vmul.f32 %v2985_v2, %v1777_v8 }
0x14c5   :  { %1784 = vrot.lane.b32.xlu1 %v1782_v43, %s3141_s3 }
0x1537   :  { %v1785_v44 = vpop.permute.xlu1 %1784 }
0x1538   :  { %v1787_v45 = vadd.f32 %v1785_v44, %v1781_v40 }
0x153a   :  { %2988 = vtanh.f32 %v1787_v45 }
0x1544   :  { %v2989_v46 = vpop.eup %2988 }
0x1545   :  { %v1789_v16 = vmul.f32 %v2989_v46, %v1777_v8 }
0x1547   :  { %v1791_v3 = vrot.slane %v1789_v16, 4 }
0x1549   :  { %1794 = vrot.lane.b32.xlu0 %v1791_v3, %s3141_s3  ;;  %v1793_v5 = vadd.f32 %v1791_v3, %v1676_v31 }
0x15bb   :  { %v1795_v47 = vpop.permute.xlu0 %1794 }
0x15bc   :  { %2531 = vmatmul.mubr.msk.f32.vlgmr.msra.gmra.mrb[14].mxu1 %vm239_vm5, %v1795_v47 }
0x15bd   :  { %2807 = vmatpush1.bf16.msra.mxu1 %v3549_v9  ;;  %2102 = vmatprep.mubr.f32.mxu1 %v3139_v0 }
0x15be   :  { %2809 = vmatprep.subr.bf16.mxu1 %v3553_v12 }
0x15c1   :  { %2811 = vmatpush1.bf16.msra.mxu1 %v3555_v17 }
0x15c2   :  { %2813 = vmatprep.subr.bf16.mxu1 %v3560_v28 }
0x15c5   :  { %2815 = vmatpush1.bf16.msra.mxu1 %v3562_v32 }
0x15c6   :  { %2817 = vmatprep.subr.bf16.mxu1 %v3568_v23 }
0x15c9   :  { %2819 = vmatpush1.bf16.msra.mxu1 %v3570_v24 }
0x15ca   :  { %2837 = vmatprep.subr.bf16.mxu1 %v3546_v59  ;;  %v1896_v59 = vrot.slane %v1787_v45, 6 }
0x168f   :  { %v1864_v39 = vpop.f32.mrb[14].mxu1 }
0x1690   :  { %v1871_v48 = vrot.slane %v1864_v39, 2  ;;  %v1866_v49 = vpop.f32.mrb[15].mxu1 }
0x1691   :  { %v1872_v51 = vrot.slane %v1866_v49, 2 }
0x1692   :  { %v1875_v53 = vadd.f32 %v1871_v48, %v3656_v20 }
0x1693   :  { %v1876_v55 = vadd.f32 %v1872_v51, %v3665_v29 }
0x1694   :  { %v2532_v56 = vmul.f32 -1.442695, %v1875_v53 }
0x1695   :  { %v1878_v57 = vmul.f32 %v1876_v55, %v3356_v10 }
0x1696   :  { %2990 = vpow2.f32 %v2532_v56 }
0x1697   :  { %v2533_v60 = vmul.f32 -1.442695, %v1878_v57 }
0x1699   :  { %2992 = vpow2.f32 %v2533_v60 }
0x16a0   :  { %v2991_v1 = vpop.eup %2990 }
0x16a1   :  { %v1885_v58 = vadd.f32 1.0, %v2991_v1 }
0x16a3   :  { %v2993_v62 = vpop.eup %2992  ;;  %2994 = vrcp.f32 %v1885_v58 }
0x16a4   :  { %v1886_v7 = vadd.f32 1.0, %v2993_v62 }
0x16a6   :  { %2996 = vrcp.f32 %v1886_v7 }
0x16ad   :  { %v2995_v11 = vpop.eup %2994 }
0x16ae   :  { %v1898_v13 = vmul.f32 %v2995_v11, %v1896_v59 }
0x16b0   :  { %v2997_v63 = vpop.eup %2996 }
0x16b1   :  { %v1892_v20 = vmul.f32 %v2997_v63, %v3356_v10 }
0x16b3   :  { %v1894_v29 = vsub.f32 %v1892_v20, %v3363_v26 }
0x16b5   :  { %v1899_v38 = vmul.f32 %v2995_v11, %v1894_v29 }
0x16b7   :  { %1901 = vrot.lane.b32.xlu1 %v1899_v38, %s3141_s3 }
0x1729   :  { %v1902_v42 = vpop.permute.xlu1 %1901 }
0x172a   :  { %v1904_v22 = vadd.f32 %v1902_v42, %v1898_v13 }
0x172c   :  { %2998 = vtanh.f32 %v1904_v22  ;;  %v2015_v41 = vrot.slane %v1904_v22, 6 }
0x1736   :  { %v2999_v19 = vpop.eup %2998 }
0x1737   :  { %v1906_v21 = vmul.f32 %v2999_v19, %v1894_v29 }
0x1739   :  { %v1908_v4 = vrot.slane %v1906_v21, 6 }
0x173b   :  { %1919 = vrot.lane.b32.xlu0 %v1908_v4, %s3141_s3  ;;  %v1910_v6 = vadd.f32 %v1908_v4, %v1793_v5 }
0x17ad   :  { %v1920_v50 = vpop.permute.xlu0 %1919 }
0x17ae   :  { %2534 = vmatmul.mubr.msk.f32.vlgmr.msra.gmra.mrb[16].mxu0 %vm239_vm5, %v1920_v50 }
0x17af   :  { %2823 = vmatpush1.bf16.msra.mxu0 %v3549_v9  ;;  %2219 = vmatprep.mubr.f32.mxu0 %v3139_v0 }
0x17b0   :  { %2825 = vmatprep.subr.bf16.mxu0 %v3553_v12 }
0x17b3   :  { %2827 = vmatpush1.bf16.msra.mxu0 %v3555_v17 }
0x17b4   :  { %2829 = vmatprep.subr.bf16.mxu0 %v3560_v28 }
0x17b7   :  { %2831 = vmatpush1.bf16.msra.mxu0 %v3562_v32 }
0x17b8   :  { %2833 = vmatprep.subr.bf16.mxu0 %v3568_v23 }
0x17bb   :  { %2835 = vmatpush1.bf16.msra.mxu0 %v3570_v24 }
0x1881   :  { %v1989_v52 = vpop.f32.mrb[16].mxu0 }
0x1882   :  { %v1994_v33 = vadd.f32 %v1989_v52, %v3636_v36  ;;  %v1991_v25 = vpop.f32.mrb[17].mxu0 }
0x1883   :  { %v1995_v27 = vadd.f32 %v1991_v25, %v3644_v14 }
0x1884   :  { %v2535_v30 = vmul.f32 -1.442695, %v1994_v33 }
0x1885   :  { %v1997_v54 = vmul.f32 %v1995_v27, %v3356_v10 }
0x1886   :  { %3000 = vpow2.f32 %v2535_v30 }
0x1887   :  { %v2536_v35 = vmul.f32 -1.442695, %v1997_v54 }
0x1889   :  { %3002 = vpow2.f32 %v2536_v35 }
0x1890   :  { %v3001_v37 = vpop.eup %3000 }
0x1891   :  { %v2004_v61 = vadd.f32 1.0, %v3001_v37 }
0x1893   :  { %v3003_v2 = vpop.eup %3002  ;;  %3004 = vrcp.f32 %v2004_v61 }
0x1894   :  { %v2005_v40 = vadd.f32 1.0, %v3003_v2 }
0x1896   :  { %3006 = vrcp.f32 %v2005_v40 }
0x189d   :  { %v3005_v18 = vpop.eup %3004 }
0x189e   :  { %v2017_v8 = vmul.f32 %v3005_v18, %v2015_v41 }
0x18a0   :  { %v3007_v43 = vpop.eup %3006 }
0x18a1   :  { %v2011_v44 = vmul.f32 %v3007_v43, %v3356_v10 }
0x18a3   :  { %v2013_v45 = vsub.f32 %v2011_v44, %v3363_v26 }
0x18a5   :  { %v2018_v46 = vmul.f32 %v3005_v18, %v2013_v45 }
0x18a7   :  { %2020 = vrot.lane.b32.xlu1 %v2018_v46, %s3141_s3 }
0x1919   :  { %v2021_v16 = vpop.permute.xlu1 %2020 }
0x191a   :  { %v2023_v31 = vadd.f32 %v2021_v16, %v2017_v8 }
0x191c   :  { %3008 = vtanh.f32 %v2023_v31 }
0x1926   :  { %v3009_v3 = vpop.eup %3008 }
0x1927   :  { %v2025_v5 = vmul.f32 %v3009_v3, %v2013_v45 }
0x1929   :  { %2034 = vrot.lane.b32.xlu0 %v2025_v5, %s3141_s3  ;;  %v2026_v47 = vadd.f32 %v2025_v5, %v1910_v6 }
0x199b   :  { %v2035_v39 = vpop.permute.xlu0 %2034 }
0x199c   :  { %2537 = vmatmul.mubr.msk.f32.vlgmr.msra.gmra.mrb[16].mxu1 %vm239_vm5, %v2035_v39 }
0x199d   :  { %2839 = vmatpush1.bf16.msra.mxu1 %v3549_v9  ;;  %2336 = vmatprep.mubr.f32.mxu1 %v3139_v0 }
0x199e   :  { %2841 = vmatprep.subr.bf16.mxu1 %v3553_v12 }
0x19a1   :  { %2843 = vmatpush1.bf16.msra.mxu1 %v3555_v17 }
0x19a2   :  { %2845 = vmatprep.subr.bf16.mxu1 %v3560_v28 }
0x19a5   :  { %2847 = vmatpush1.bf16.msra.mxu1 %v3562_v32 }
0x19a6   :  { %2849 = vmatprep.subr.bf16.mxu1 %v3568_v23 }
0x19a9   :  { %2851 = vmatpush1.bf16.msra.mxu1 %v3570_v24  ;;  %v2136_v24 = vrot.slane %v2023_v31, 6 }
0x1a6f   :  { %v2104_v48 = vpop.f32.mrb[16].mxu1 }
0x1a70   :  { %v2111_v49 = vrot.slane %v2104_v48, 6  ;;  %v2106_v51 = vpop.f32.mrb[17].mxu1 }
0x1a71   :  { %v2112_v53 = vrot.slane %v2106_v51, 6 }
0x1a72   :  { %v2115_v9 = vadd.f32 %v2111_v49, %v3640_v34 }
0x1a73   :  { %v2116_v55 = vadd.f32 %v2112_v53, %v3648_v15 }
0x1a74   :  { %v2538_v56 = vmul.f32 -1.442695, %v2115_v9 }
0x1a75   :  { %v2118_v12 = vmul.f32 %v2116_v55, %v3356_v10 }
0x1a76   :  { %3010 = vpow2.f32 %v2538_v56 }
0x1a77   :  { %v2539_v17 = vmul.f32 -1.442695, %v2118_v12 }
0x1a79   :  { %3012 = vpow2.f32 %v2539_v17 }
0x1a80   :  { %v3011_v28 = vpop.eup %3010 }
0x1a81   :  { %v2125_v32 = vadd.f32 1.0, %v3011_v28 }
0x1a83   :  { %v3013_v57 = vpop.eup %3012  ;;  %3014 = vrcp.f32 %v2125_v32 }
0x1a84   :  { %v2126_v23 = vadd.f32 1.0, %v3013_v57 }
0x1a86   :  { %3016 = vrcp.f32 %v2126_v23 }
0x1a8d   :  { %v3015_v60 = vpop.eup %3014 }
0x1a8e   :  { %v2138_v1 = vmul.f32 %v3015_v60, %v2136_v24  ;;  %v2386_v24 = vld [vmem:[%s3824_s7] sm:$0xff] }
0x1a90   :  { %v3017_v58 = vpop.eup %3016 }
0x1a91   :  { %v2132_v62 = vmul.f32 %v3017_v58, %v3356_v10  ;;  %v3143_v58 = vmov 0.0|0.0  }
0x1a92   :  { %2852 = vmatprep.subr.bf16.mxu0 %v3143_v58 }
0x1a93   :  { %v2134_v7 = vsub.f32 %v2132_v62, %v3363_v26 }
0x1a95   :  { %v2139_v59 = vmul.f32 %v3015_v60, %v2134_v7  ;;  %v2387_v60 = vld [vmem:[%s3824_s7 + $0x8] sm:$0xff] }
0x1a97   :  { %2141 = vrot.lane.b32.xlu1 %v2139_v59, %s3141_s3  ;;  %v2391_v59 = vld [vmem:[%s3824_s7 + $0x28] sm:$0xff] }
0x1b09   :  { %v2142_v11 = vpop.permute.xlu1 %2141 }
0x1b0a   :  { %v2144_v13 = vadd.f32 %v2142_v11, %v2138_v1  ;;  %v2388_v1 = vld [vmem:[%s3824_s7 + $0x10] sm:$0xff] }
0x1b0c   :  { %3018 = vtanh.f32 %v2144_v13  ;;  %v2253_v37 = vrot.slane %v2144_v13, 6  ;;  %v2392_v13 = vld [vmem:[%s3824_s7 + $0x30] sm:$0xff] }
0x1b16   :  { %v3019_v63 = vpop.eup %3018 }
0x1b17   :  { %v2146_v20 = vmul.f32 %v3019_v63, %v2134_v7  ;;  %v2390_v7 = vld [vmem:[%s3824_s7 + $0x20] sm:$0xff] }
0x1b18   :  { %v2859_v11 = vpack.c.bf16 %v2391_v59, %v2390_v7 }
0x1b19   :  { %v2148_v29 = vrot.slane %v2146_v20, 2 }
0x1b1b   :  { %2151 = vrot.lane.b32.xlu0 %v2148_v29, %s3141_s3  ;;  %v2150_v38 = vadd.f32 %v2148_v29, %v2026_v47 }
0x1b8d   :  { %v2152_v42 = vpop.permute.xlu0 %2151 }
0x1b8e   :  { %2540 = vmatmul.mubr.msk.f32.vlgmr.msra.gmra.mrb[18].mxu0 %vm239_vm5, %v2152_v42 }
0x1b8f   :  { %2573 = vmatprep.mubr.msk.f32.mxu0 %vm3144_vm10, %v3139_v0  ;;  %v2393_v0 = vld [vmem:[%s3824_s7 + $0x38] sm:$0xff] }
0x1b90   :  { %v2862_v63 = vpack.c.bf16 %v2393_v0, %v2392_v13 }
0x1c61   :  { %v2221_v22 = vpop.f32.mrb[18].mxu0 }
0x1c62   :  { %v2228_v19 = vrot.slane %v2221_v22, 4  ;;  %v2223_v21 = vpop.f32.mrb[19].mxu0 }
0x1c63   :  { %v2229_v4 = vrot.slane %v2223_v21, 4 }
0x1c64   :  { %v2232_v6 = vadd.f32 %v2228_v19, %v3636_v36 }
0x1c65   :  { %v2233_v50 = vadd.f32 %v2229_v4, %v3644_v14 }
0x1c66   :  { %v2541_v52 = vmul.f32 -1.442695, %v2232_v6  ;;  %v2546_v6 = vld [vmem:[%s3825_s8] ss:$0 sm:$0xff] }
0x1c67   :  { %v2235_v33 = vmul.f32 %v2233_v50, %v3356_v10 }
0x1c68   :  { %3020 = vpow2.f32 %v2541_v52 }
0x1c69   :  { %v2542_v25 = vmul.f32 -1.442695, %v2235_v33 }
0x1c6b   :  { %3022 = vpow2.f32 %v2542_v25 }
0x1c72   :  { %v3021_v27 = vpop.eup %3020 }
0x1c73   :  { %v2242_v30 = vadd.f32 1.0, %v3021_v27 }
0x1c75   :  { %v3023_v54 = vpop.eup %3022  ;;  %3024 = vrcp.f32 %v2242_v30 }
0x1c76   :  { %v2243_v35 = vadd.f32 1.0, %v3023_v54 }
0x1c78   :  { %3026 = vrcp.f32 %v2243_v35 }
0x1c7f   :  { %v3025_v61 = vpop.eup %3024 }
0x1c80   :  { %v2255_v2 = vmul.f32 %v3025_v61, %v2253_v37 }
0x1c82   :  { %v3027_v40 = vpop.eup %3026 }
0x1c83   :  { %v2249_v36 = vmul.f32 %v3027_v40, %v3356_v10 }
0x1c85   :  { %v2251_v14 = vsub.f32 %v2249_v36, %v3363_v26 }
0x1c87   :  { %v2256_v41 = vmul.f32 %v3025_v61, %v2251_v14 }
0x1c89   :  { %2258 = vrot.lane.b32.xlu1 %v2256_v41, %s3141_s3 }
0x1cfb   :  { %v2259_v18 = vpop.permute.xlu1 %2258 }
0x1cfc   :  { %v2261_v8 = vadd.f32 %v2259_v18, %v2255_v2 }
0x1cfe   :  { %3028 = vtanh.f32 %v2261_v8  ;;  %v2370_v17 = vrot.slane %v2261_v8, 6 }
0x1d08   :  { %v3029_v43 = vpop.eup %3028 }
0x1d09   :  { %v2263_v44 = vmul.f32 %v3029_v43, %v2251_v14 }
0x1d0b   :  { %v2265_v45 = vrot.slane %v2263_v44, 4 }
0x1d0d   :  { %2268 = vrot.lane.b32.xlu0 %v2265_v45, %s3141_s3  ;;  %v2267_v46 = vadd.f32 %v2265_v45, %v2150_v38 }
0x1d7f   :  { %v2269_v16 = vpop.permute.xlu0 %2268 }
0x1d80   :  { %2543 = vmatmul.mubr.msk.f32.vlgmr.msra.gmra.mrb[18].mxu1 %vm239_vm5, %v2269_v16 }
0x1e53   :  { %v2338_v31 = vpop.f32.mrb[18].mxu1 }
0x1e54   :  { %v2345_v3 = vrot.slane %v2338_v31, 2  ;;  %v2340_v5 = vpop.f32.mrb[19].mxu1 }
0x1e55   :  { %v2346_v47 = vrot.slane %v2340_v5, 2 }
0x1e56   :  { %v2349_v39 = vadd.f32 %v2345_v3, %v3640_v34 }
0x1e57   :  { %v2350_v48 = vadd.f32 %v2346_v47, %v3648_v15 }
0x1e58   :  { %v2544_v49 = vmul.f32 -1.442695, %v2349_v39 }
0x1e59   :  { %v2352_v51 = vmul.f32 %v2350_v48, %v3356_v10 }
0x1e5a   :  { %3030 = vpow2.f32 %v2544_v49 }
0x1e5b   :  { %v2545_v53 = vmul.f32 -1.442695, %v2352_v51 }
0x1e5d   :  { %3032 = vpow2.f32 %v2545_v53 }
0x1e64   :  { %v3031_v9 = vpop.eup %3030 }
0x1e65   :  { %v2359_v55 = vadd.f32 1.0, %v3031_v9 }
0x1e67   :  { %v3033_v56 = vpop.eup %3032  ;;  %3034 = vrcp.f32 %v2359_v55 }
0x1e68   :  { %v2360_v12 = vadd.f32 1.0, %v3033_v56 }
0x1e6a   :  { %3036 = vrcp.f32 %v2360_v12 }
0x1e71   :  { %v3035_v28 = vpop.eup %3034 }
0x1e72   :  { %v2372_v32 = vmul.f32 %v3035_v28, %v2370_v17 }
0x1e74   :  { %v3037_v57 = vpop.eup %3036 }
0x1e75   :  { %v2366_v34 = vmul.f32 %v3037_v57, %v3356_v10  ;;  %v2853_v10 = vpack.c.bf16 %v2387_v60, %v2386_v24 }
0x1e77   :  { %v2368_v15 = vsub.f32 %v2366_v34, %v3363_v26  ;;  %v2389_v26 = vld [vmem:[%s3824_s7 + $0x18] sm:$0xff]  ;;  %2854 = vmatpush3.bf16.msra.mxu0 %v2853_v10  ;;  %s3145_s7 = smov [#allocation10]  }
0x1e78   :  { %v2856_v62 = vpack.c.bf16 %v2389_v26, %v2388_v1  ;;  %2855 = vmatprep.subr.bf16.mxu0 %v3143_v58  ;;  %s2484_s29 = sshll.u32 %s3145_s7, 4  ;;  %s2485_s29 = int_to_ptr.vmem [resolvable:$true] %s2484_s29 }
0x1e79   :  { %v2373_v23 = vmul.f32 %v3035_v28, %v2368_v15  ;;  %s3106_s30 = scalar_lea.vmem %s2485_s29, 32  ;;  %p3111_p11 = scmp.lt.s32.totalorder %s2485_s29, %s2485_s29 }
0x1e7a   :  { %p3107_p10 = scmp.ne.s32.totalorder %s2485_s29, %s3106_s30  ;;  %p3112_p12 = scmp.lt.s32.totalorder %s3106_s30, %s3106_s30 }
0x1e7b   :  { %2375 = vrot.lane.b32.xlu1 %v2373_v23, %s3141_s3  ;;  %2857 = vmatpush3.bf16.msra.mxu0 %v2856_v62 }
0x1e7c   :  { %2858 = vmatprep.subr.bf16.mxu0 %v3143_v58  ;;  %p3113_p13 = por %p3112_p12, %p3111_p11 }
0x1e7e   :  { %p3114_p0 = pnand %p3113_p13, %p3107_p10 }
0x1e7f   :  { %2860 = vmatpush3.bf16.msra.mxu0 %v2859_v11 }
0x1e80   :  { %2861 = vmatprep.subr.bf16.mxu0 %v3143_v58 }
0x1e83   :  { %2863 = vmatpush3.bf16.msra.mxu0 %v2862_v63 }
0x1eed   :  { %v2376_v20 = vpop.permute.xlu1 %2375 }
0x1eee   :  { %v2378_v29 = vadd.f32 %v2376_v20, %v2372_v32 }
0x1ef0   :  { %3038 = vtanh.f32 %v2378_v29 }
0x1efa   :  { %v3039_v38 = vpop.eup %3038 }
0x1efb   :  { %v2380_v42 = vmul.f32 %v3039_v38, %v2368_v15 }
0x1efd   :  { %v2382_v22 = vrot.slane %v2380_v42, 6 }
0x1eff   :  { %v2384_v19 = vadd.f32 %v2382_v22, %v2267_v46 }
0x1f01   :  { %v2385_v21 = vmul.f32 0.125, %v2384_v19 }
0x1f03   :  { %2402 = vrot.lane.b32.xlu0 %v2385_v21, %s3141_s3 }
0x1f75   :  { %v2403_v4 = vpop.permute.xlu0 %2402 }
0x1f76   :  { %2574 = vmatmul.mubr.msk.f32.vlgmr.msra.gmra.mrb[20].mxu0 %vm239_vm5, %v2403_v4 }
0x2049   :  { %v2472_v50 = vpop.f32.mrb[20].mxu0 }
0x204a   :  { %v2473_v52 = vadd.f32 %v2546_v6, %v2472_v50  ;;  %v2575_v33 = vpop.f32.mrb[21].mxu0 }
0x204c   :  { %2477 = vst.msk [vmem:[#allocation10] sm:$0x3] %vm2476_vm11, %v2473_v52 }
0x204d   :  { %3117 = shalt.err (!%p3114_p0)
}
0x204e   :  { %s3118_s13 = scalar_lea.hbm %s3826_s9, 32 }
0x204f   :  { %p3119_p1 = scmp.ne.s32.totalorder %s3826_s9, %s3118_s13  ;;  %p3122_p2 = scmp.lt.u32.totalorder %s3118_s13, %s3826_s9 }
0x2051   :  { %p3124_p3 = pnand %p3122_p2, %p3119_p1 }
0x2053   :  { %3127 = shalt.err (!%p3124_p3)
}
0x2054   :  { %2487 = dma.vmem_to_hbm [thread:$0]  %s2485_s29, 32, %s3826_s9, [#allocation6]  }
0x2055   :  { %3132 = dma.done.wait [#allocation6], 32  }
0x2056   :  { %3133 = vsyncadd [#allocation6], 4294967264 }
0x2057   :  { %2491 = vsyncpa [#allocation5], 1 }
0x2058   :  { %2492 = vsyncpa [#allocation8], 1 }
0x2059   :  { %2493 = vsyncpa [#allocation6], 1 }

</bundles_post_ra>
